<compile_context>
chip_gen: v5e
topology: v5e:2x2
jax: 0.10.0
libtpu: 0.0.40
codegen_flags: <defaults>
</compile_context>

<pallas_src>
import functools

import jax
import jax.numpy as jnp
from jax.experimental import pallas as pl
from jax.experimental.pallas import tpu as pltpu

LANE = 128


def _round_up(v, m):
    return ((v + m - 1) // m) * m


# ----------------------------------------------------------------------------
# Fused GCN kernel: one grid step per group of B_TILE packed graphs.
#   a_ref  : (1, M, M)       bf16  block-diagonal 0/1 adjacency, M = B_TILE*N
#   x_ref  : (M, Fpad)       f32   packed node features (zero-padded lanes)
#   w_ref  : (L, Fpad, Fpad) bf16  per-layer weights, transposed (Fin, Fout)
#   b_ref  : (L, 1, Fpad)    f32   per-layer biases
#   wf_ref : (Fpad, Fpad)    bf16  final FC weight, transposed + padded
#   bf_ref : (1, Fpad)       f32   final FC bias
#   o_ref  : (B_TILE, Fpad)  f32   per-graph logits (padded lanes)
# ----------------------------------------------------------------------------
def _gcn_fused_kernel(a_ref, x_ref, w_ref, b_ref, wf_ref, bf_ref, o_ref, *,
                      n_nodes, b_tile):
    M = a_ref.shape[-1]                     # packed node count = b_tile * n_nodes
    A_bf = a_ref[0]                         # (M, M) bf16
    x = x_ref[...]                          # (M, Fpad) f32

    # ---- normalization, hoisted out of the layer loop (A is layer-invariant) ----
    # L @ x == A_norm @ x + d2 * x   with
    #   A_norm = d_hat[:,None] * A * d_hat[None,:]   (bf16 MXU operand)
    #   d2     = d_hat * d_hat                       (exact self-loop term, f32)
    # d_hat uses dim=1 row sums of A_hat = A + I, matching the torch reference.
    A_f32 = A_bf.astype(jnp.float32)
    deg_col = jnp.sum(A_f32, axis=1, keepdims=True) + 1.0          # (M,1) row sums
    ones_row = jnp.ones((1, M), jnp.bfloat16)
    # same row sums, lane-oriented: ones @ A^T on the MXU (exact for 0/1, f32 acc)
    deg_row = jax.lax.dot_general(
        ones_row, A_bf, (((1,), (1,)), ((), ())),
        preferred_element_type=jnp.float32) + 1.0                   # (1,M)
    d_col = jax.lax.rsqrt(deg_col + 1e-5)                           # EUP rsqrt
    d_row = jax.lax.rsqrt(deg_row + 1e-5)
    d2_col = d_col * d_col                                          # (M,1) f32
    A_norm_bf = ((d_col * A_f32) * d_row).astype(jnp.bfloat16)      # (M,M) bf16

    # ---- GraphConv stack: per layer = 2 full-width MXU matmuls + 1 f32 axpy ----
    num_layers = w_ref.shape[0]
    for l in range(num_layers):                                     # static unroll
        agg = jnp.dot(A_norm_bf, x.astype(jnp.bfloat16),
                      preferred_element_type=jnp.float32) + d2_col * x
        z = jnp.dot(agg.astype(jnp.bfloat16), w_ref[l],
                    preferred_element_type=jnp.float32) + b_ref[l]
        x = jnp.maximum(z, 0.0)                                     # ReLU

    # ---- per-graph global max pool + batched Linear head ----
    pooled = jnp.concatenate(
        [jnp.max(x[g * n_nodes:(g + 1) * n_nodes, :], axis=0, keepdims=True)
         for g in range(b_tile)], axis=0)                           # (b_tile, Fpad)
    out = jnp.dot(pooled.astype(jnp.bfloat16), wf_ref[...],
                  preferred_element_type=jnp.float32) + bf_ref[...]
    o_ref[...] = out.astype(o_ref.dtype)


def gcn_fused(x_packed, A_blk, w_stack, b_stack, wf_pad, bf_pad, *, n_nodes, b_tile):
    """x_packed: (G*M, Fpad) f32, A_blk: (G, M, M) bf16 -> (G*b_tile, Fpad) logits."""
    G, M, _ = A_blk.shape
    Fpad = x_packed.shape[-1]
    L = w_stack.shape[0]
    kernel = functools.partial(_gcn_fused_kernel, n_nodes=n_nodes, b_tile=b_tile)
    return pl.pallas_call(
        kernel,
        out_shape=jax.ShapeDtypeStruct((G * b_tile, Fpad), jnp.float32),
        grid_spec=pltpu.PrefetchScalarGridSpec(
            num_scalar_prefetch=0,
            grid=(G,),
            in_specs=[
                pl.BlockSpec((1, M, M), lambda i: (i, 0, 0)),
                pl.BlockSpec((M, Fpad), lambda i: (i, 0)),
                pl.BlockSpec((L, Fpad, Fpad), lambda i: (0, 0, 0)),
                pl.BlockSpec((L, 1, Fpad), lambda i: (0, 0, 0)),
                pl.BlockSpec((Fpad, Fpad), lambda i: (0, 0)),
                pl.BlockSpec((1, Fpad), lambda i: (0, 0)),
            ],
            out_specs=pl.BlockSpec((b_tile, Fpad), lambda i: (i, 0)),
        ),
        # Packed-group axis is independent -> shards across TCs on v7x.
        compiler_params=pltpu.CompilerParams(
            dimension_semantics=("parallel",)),
    )(A_blk, x_packed, w_stack, b_stack, wf_pad, bf_pad)


# ----------------------------------------------------------------------------
# Parameter init (matches nn.Linear default uniform init) and host-side packing.
# ----------------------------------------------------------------------------
def init_gcn_params(key, in_features, out_features, filters):
    params = {"gconv": [], "fc": None}
    prev = in_features
    for f in filters:
        key, kw, kb = jax.random.split(key, 3)
        bound = 1.0 / (prev ** 0.5)
        W = jax.random.uniform(kw, (f, prev), jnp.float32, -bound, bound)
        b = jax.random.uniform(kb, (f,), jnp.float32, -bound, bound)
        params["gconv"].append((W, b))
        prev = f
    key, kw, kb = jax.random.split(key, 3)
    bound = 1.0 / (prev ** 0.5)
    Wf = jax.random.uniform(kw, (out_features, prev), jnp.float32, -bound, bound)
    bf = jax.random.uniform(kb, (out_features,), jnp.float32, -bound, bound)
    params["fc"] = (Wf, bf)
    return params


def prepare_params(params):
    """Transpose, zero-pad to 128 lanes, stack layers, cast matmul weights to bf16."""
    Ws = [W for W, _ in params["gconv"]]
    Wf, bf = params["fc"]
    dims = ([W.shape[0] for W in Ws] + [W.shape[1] for W in Ws]
            + [Wf.shape[0], Wf.shape[1]])
    Fpad = _round_up(max(dims + [LANE]), LANE)

    w_list, b_list = [], []
    for W, b in params["gconv"]:
        fout, fin = W.shape
        Wt = jnp.zeros((Fpad, Fpad), jnp.float32).at[:fin, :fout].set(W.T)
        bp = jnp.zeros((1, Fpad), jnp.float32).at[0, :fout].set(b)
        w_list.append(Wt)
        b_list.append(bp)
    w_stack = jnp.stack(w_list).astype(jnp.bfloat16)   # (L, Fpad, Fpad)
    b_stack = jnp.stack(b_list)                        # (L, 1, Fpad) f32

    fo, fi = Wf.shape
    wf_pad = (jnp.zeros((Fpad, Fpad), jnp.float32)
              .at[:fi, :fo].set(Wf.T).astype(jnp.bfloat16))
    bf_pad = jnp.zeros((1, Fpad), jnp.float32).at[0, :fo].set(bf)
    return {"w": w_stack, "b": b_stack, "wf": wf_pad, "bf": bf_pad}


@functools.partial(jax.jit, static_argnames=("out_features", "b_tile"))
def gcn_forward(packed, x, A, *, out_features, b_tile):
    B, N, Fin = x.shape
    Fpad = packed["w"].shape[-1]
    Bp = _round_up(B, b_tile)          # pad batch with empty graphs (sliced off)
    G = Bp // b_tile
    M = b_tile * N

    # Pack b_tile graphs per grid step: features as one (M, Fpad) slab per group.
    x_pad = jnp.pad(x, ((0, Bp - B), (0, 0), (0, Fpad - Fin)))
    x_packed = x_pad.reshape(Bp * N, Fpad)

    # Block-diagonal adjacency per group (graphs never interact), cast to bf16
    # on host (0/1 entries exact) -> half the A DMA + VMEM per grid step.
    A_pad = jnp.pad(A, ((0, Bp - B), (0, 0), (0, 0))).reshape(G, b_tile, N, N)
    eye_bt = jnp.eye(b_tile, dtype=A.dtype)
    A_blk = jnp.einsum('gbij,bc->gbicj', A_pad, eye_bt).reshape(G, M, M)
    A_blk = A_blk.astype(jnp.bfloat16)

    out = gcn_fused(x_packed, A_blk, packed["w"], packed["b"],
                    packed["wf"], packed["bf"], n_nodes=N, b_tile=b_tile)
    out = out[:B, :out_features]
    # torch .squeeze(): drop size-1 dims (no-op for B>1, Out>1)
    return jnp.squeeze(out)


if __name__ == "__main__":
    B, N = 2, 16
    in_features, out_features = 8, 4
    filters = [32, 32, 32]

    # Pack graphs so the neighborhood matmul has 128 packed rows (v5e MXU-native).
    # On v6e/v7x, 256 // N fills the 256x256 MXU; keep the resulting grid length
    # even on v7x so both TensorCores get work.
    b_tile = max(1, 128 // N)

    key = jax.random.PRNGKey(0)
    kx, ka, kp = jax.random.split(key, 3)

    x = jax.random.normal(kx, (B, N, in_features), jnp.float32)
    # symmetric 0/1 adjacency (no self loops), deterministic
    A_raw = (jax.random.uniform(ka, (B, N, N)) > 0.5).astype(jnp.float32)
    A = jnp.maximum(A_raw, jnp.transpose(A_raw, (0, 2, 1)))
    eye = jnp.eye(N, dtype=jnp.float32)[None]
    A = A * (1.0 - eye)

    params = init_gcn_params(kp, in_features, out_features, filters)
    packed = prepare_params(params)

    out = gcn_forward(packed, x, A, out_features=out_features, b_tile=b_tile)
    jax.block_until_ready(out)
    assert out.shape == (B, out_features)
    print("KERNEL_OK")
</pallas_src>

<mosaic_0001>
module attributes {stable_mosaic.version = 11 : i64} {
  func.func @_gcn_fused_kernel(%arg0: i32, %arg1: memref<1x128x128xbf16, #tpu.memory_space<vmem>>, %arg2: memref<128x128xf32, #tpu.memory_space<vmem>>, %arg3: memref<3x128x128xbf16, #tpu.memory_space<vmem>>, %arg4: memref<3x1x128xf32, #tpu.memory_space<vmem>>, %arg5: memref<128x128xbf16, #tpu.memory_space<vmem>>, %arg6: memref<1x128xf32, #tpu.memory_space<vmem>>, %arg7: memref<8x128xf32, #tpu.memory_space<vmem>>) attributes {dimension_semantics = [#tpu.dimension_semantics<parallel>], iteration_bounds = array<i64: 1>, scalar_prefetch = 0 : i64, scratch_operands = 0 : i64, tpu.core_type = #tpu.core_type<tc>, window_params = [{transform_indices = @transform_0, window_bounds = array<i64: 1, 128, 128>}, {transform_indices = @transform_1, window_bounds = array<i64: 128, 128>}, {pipeline_mode = #tpu.pipeline_mode<synchronous>, transform_indices = @transform_2, window_bounds = array<i64: 3, 128, 128>}, {pipeline_mode = #tpu.pipeline_mode<synchronous>, transform_indices = @transform_3, window_bounds = array<i64: 3, 1, 128>}, {pipeline_mode = #tpu.pipeline_mode<synchronous>, transform_indices = @transform_4, window_bounds = array<i64: 128, 128>}, {pipeline_mode = #tpu.pipeline_mode<synchronous>, transform_indices = @transform_5, window_bounds = array<i64: 1, 128>}, {transform_indices = @transform_6, window_bounds = array<i64: 8, 128>}]} {
    %c0 = arith.constant 0 : index
    %c0_0 = arith.constant 0 : index
    %c0_1 = arith.constant 0 : index
    %0 = vector.load %arg1[%c0, %c0_0, %c0_1] : memref<1x128x128xbf16, #tpu.memory_space<vmem>>, vector<1x128x128xbf16>
    %1 = vector.shape_cast %0 : vector<1x128x128xbf16> to vector<128x128xbf16>
    %c0_2 = arith.constant 0 : index
    %c0_3 = arith.constant 0 : index
    %2 = vector.load %arg2[%c0_2, %c0_3] : memref<128x128xf32, #tpu.memory_space<vmem>>, vector<128x128xf32>
    %3 = arith.extf %1 : vector<128x128xbf16> to vector<128x128xf32>
    %cst = arith.constant dense<0.000000e+00> : vector<128xf32>
    %4 = vector.multi_reduction <add>, %3, %cst [1] : vector<128x128xf32> to vector<128xf32>
    %5 = vector.shape_cast %4 : vector<128xf32> to vector<128x1xf32>
    %cst_4 = arith.constant 1.000000e+00 : f32
    %6 = vector.broadcast %cst_4 : f32 to vector<128x1xf32>
    %7 = arith.addf %5, %6 : vector<128x1xf32>
    %cst_5 = arith.constant 1.000000e+00 : bf16
    %8 = vector.broadcast %cst_5 : bf16 to vector<1x128xbf16>
    %cst_6 = arith.constant dense<0.000000e+00> : vector<1x128xf32>
    %9 = tpu.matmul %8, %1, %cst_6 {dimension_numbers = #tpu.dot_dimension_numbers<[1], [1], [0], [0], [0, 0, 1, 0], [], []>} : vector<1x128xbf16>, vector<128x128xbf16>, vector<1x128xf32> -> vector<1x128xf32>
    %cst_7 = arith.constant 1.000000e+00 : f32
    %10 = vector.broadcast %cst_7 : f32 to vector<1x128xf32>
    %11 = arith.addf %9, %10 : vector<1x128xf32>
    %cst_8 = arith.constant 9.99999974E-6 : f32
    %12 = vector.broadcast %cst_8 : f32 to vector<128x1xf32>
    %13 = arith.addf %7, %12 : vector<128x1xf32>
    %14 = math.rsqrt %13 : vector<128x1xf32>
    %cst_9 = arith.constant 9.99999974E-6 : f32
    %15 = vector.broadcast %cst_9 : f32 to vector<1x128xf32>
    %16 = arith.addf %11, %15 : vector<1x128xf32>
    %17 = math.rsqrt %16 : vector<1x128xf32>
    %18 = arith.mulf %14, %14 : vector<128x1xf32>
    %19 = vector.broadcast %14 : vector<128x1xf32> to vector<128x128xf32>
    %20 = arith.mulf %19, %3 : vector<128x128xf32>
    %21 = vector.broadcast %17 : vector<1x128xf32> to vector<128x128xf32>
    %22 = arith.mulf %20, %21 : vector<128x128xf32>
    %23 = arith.truncf %22 : vector<128x128xf32> to vector<128x128xbf16>
    %24 = arith.truncf %2 : vector<128x128xf32> to vector<128x128xbf16>
    %cst_10 = arith.constant dense<0.000000e+00> : vector<128x128xf32>
    %25 = tpu.matmul %23, %24, %cst_10 {dimension_numbers = #tpu.dot_dimension_numbers<[1], [0], [0], [1], [0, 0, 1, 1], [], []>} : vector<128x128xbf16>, vector<128x128xbf16>, vector<128x128xf32> -> vector<128x128xf32>
    %26 = vector.broadcast %18 : vector<128x1xf32> to vector<128x128xf32>
    %27 = arith.mulf %26, %2 : vector<128x128xf32>
    %28 = arith.addf %25, %27 : vector<128x128xf32>
    %29 = arith.truncf %28 : vector<128x128xf32> to vector<128x128xbf16>
    %c0_11 = arith.constant 0 : index
    %c0_12 = arith.constant 0 : index
    %c0_13 = arith.constant 0 : index
    %30 = vector.load %arg3[%c0_11, %c0_12, %c0_13] : memref<3x128x128xbf16, #tpu.memory_space<vmem>>, vector<1x128x128xbf16>
    %31 = vector.shape_cast %30 : vector<1x128x128xbf16> to vector<128x128xbf16>
    %cst_14 = arith.constant dense<0.000000e+00> : vector<128x128xf32>
    %32 = tpu.matmul %29, %31, %cst_14 {dimension_numbers = #tpu.dot_dimension_numbers<[1], [0], [0], [1], [0, 0, 1, 1], [], []>} : vector<128x128xbf16>, vector<128x128xbf16>, vector<128x128xf32> -> vector<128x128xf32>
    %c0_15 = arith.constant 0 : index
    %c0_16 = arith.constant 0 : index
    %c0_17 = arith.constant 0 : index
    %33 = vector.load %arg4[%c0_15, %c0_16, %c0_17] : memref<3x1x128xf32, #tpu.memory_space<vmem>>, vector<1x1x128xf32>
    %34 = vector.shape_cast %33 : vector<1x1x128xf32> to vector<1x128xf32>
    %35 = vector.broadcast %34 : vector<1x128xf32> to vector<128x128xf32>
    %36 = arith.addf %32, %35 : vector<128x128xf32>
    %cst_18 = arith.constant 0.000000e+00 : f32
    %37 = vector.broadcast %cst_18 : f32 to vector<128x128xf32>
    %38 = arith.maximumf %36, %37 : vector<128x128xf32>
    %39 = arith.truncf %38 : vector<128x128xf32> to vector<128x128xbf16>
    %cst_19 = arith.constant dense<0.000000e+00> : vector<128x128xf32>
    %40 = tpu.matmul %23, %39, %cst_19 {dimension_numbers = #tpu.dot_dimension_numbers<[1], [0], [0], [1], [0, 0, 1, 1], [], []>} : vector<128x128xbf16>, vector<128x128xbf16>, vector<128x128xf32> -> vector<128x128xf32>
    %41 = vector.broadcast %18 : vector<128x1xf32> to vector<128x128xf32>
    %42 = arith.mulf %41, %38 : vector<128x128xf32>
    %43 = arith.addf %40, %42 : vector<128x128xf32>
    %44 = arith.truncf %43 : vector<128x128xf32> to vector<128x128xbf16>
    %c1 = arith.constant 1 : index
    %c0_20 = arith.constant 0 : index
    %c0_21 = arith.constant 0 : index
    %45 = vector.load %arg3[%c1, %c0_20, %c0_21] : memref<3x128x128xbf16, #tpu.memory_space<vmem>>, vector<1x128x128xbf16>
    %46 = vector.shape_cast %45 : vector<1x128x128xbf16> to vector<128x128xbf16>
    %cst_22 = arith.constant dense<0.000000e+00> : vector<128x128xf32>
    %47 = tpu.matmul %44, %46, %cst_22 {dimension_numbers = #tpu.dot_dimension_numbers<[1], [0], [0], [1], [0, 0, 1, 1], [], []>} : vector<128x128xbf16>, vector<128x128xbf16>, vector<128x128xf32> -> vector<128x128xf32>
    %c1_23 = arith.constant 1 : index
    %c0_24 = arith.constant 0 : index
    %c0_25 = arith.constant 0 : index
    %48 = vector.load %arg4[%c1_23, %c0_24, %c0_25] : memref<3x1x128xf32, #tpu.memory_space<vmem>>, vector<1x1x128xf32>
    %49 = vector.shape_cast %48 : vector<1x1x128xf32> to vector<1x128xf32>
    %50 = vector.broadcast %49 : vector<1x128xf32> to vector<128x128xf32>
    %51 = arith.addf %47, %50 : vector<128x128xf32>
    %cst_26 = arith.constant 0.000000e+00 : f32
    %52 = vector.broadcast %cst_26 : f32 to vector<128x128xf32>
    %53 = arith.maximumf %51, %52 : vector<128x128xf32>
    %54 = arith.truncf %53 : vector<128x128xf32> to vector<128x128xbf16>
    %cst_27 = arith.constant dense<0.000000e+00> : vector<128x128xf32>
    %55 = tpu.matmul %23, %54, %cst_27 {dimension_numbers = #tpu.dot_dimension_numbers<[1], [0], [0], [1], [0, 0, 1, 1], [], []>} : vector<128x128xbf16>, vector<128x128xbf16>, vector<128x128xf32> -> vector<128x128xf32>
    %56 = vector.broadcast %18 : vector<128x1xf32> to vector<128x128xf32>
    %57 = arith.mulf %56, %53 : vector<128x128xf32>
    %58 = arith.addf %55, %57 : vector<128x128xf32>
    %59 = arith.truncf %58 : vector<128x128xf32> to vector<128x128xbf16>
    %c2 = arith.constant 2 : index
    %c0_28 = arith.constant 0 : index
    %c0_29 = arith.constant 0 : index
    %60 = vector.load %arg3[%c2, %c0_28, %c0_29] : memref<3x128x128xbf16, #tpu.memory_space<vmem>>, vector<1x128x128xbf16>
    %61 = vector.shape_cast %60 : vector<1x128x128xbf16> to vector<128x128xbf16>
    %cst_30 = arith.constant dense<0.000000e+00> : vector<128x128xf32>
    %62 = tpu.matmul %59, %61, %cst_30 {dimension_numbers = #tpu.dot_dimension_numbers<[1], [0], [0], [1], [0, 0, 1, 1], [], []>} : vector<128x128xbf16>, vector<128x128xbf16>, vector<128x128xf32> -> vector<128x128xf32>
    %c2_31 = arith.constant 2 : index
    %c0_32 = arith.constant 0 : index
    %c0_33 = arith.constant 0 : index
    %63 = vector.load %arg4[%c2_31, %c0_32, %c0_33] : memref<3x1x128xf32, #tpu.memory_space<vmem>>, vector<1x1x128xf32>
    %64 = vector.shape_cast %63 : vector<1x1x128xf32> to vector<1x128xf32>
    %65 = vector.broadcast %64 : vector<1x128xf32> to vector<128x128xf32>
    %66 = arith.addf %62, %65 : vector<128x128xf32>
    %cst_34 = arith.constant 0.000000e+00 : f32
    %67 = vector.broadcast %cst_34 : f32 to vector<128x128xf32>
    %68 = arith.maximumf %66, %67 : vector<128x128xf32>
    %69 = vector.extract_strided_slice %68 {offsets = [0, 0], sizes = [16, 128], strides = [1, 1]} : vector<128x128xf32> to vector<16x128xf32>
    %cst_35 = arith.constant dense<0xFF800000> : vector<128xf32>
    %70 = vector.multi_reduction <maximumf>, %69, %cst_35 [0] : vector<16x128xf32> to vector<128xf32>
    %71 = vector.shape_cast %70 : vector<128xf32> to vector<1x128xf32>
    %72 = vector.extract_strided_slice %68 {offsets = [16, 0], sizes = [16, 128], strides = [1, 1]} : vector<128x128xf32> to vector<16x128xf32>
    %cst_36 = arith.constant dense<0xFF800000> : vector<128xf32>
    %73 = vector.multi_reduction <maximumf>, %72, %cst_36 [0] : vector<16x128xf32> to vector<128xf32>
    %74 = vector.shape_cast %73 : vector<128xf32> to vector<1x128xf32>
    %75 = vector.extract_strided_slice %68 {offsets = [32, 0], sizes = [16, 128], strides = [1, 1]} : vector<128x128xf32> to vector<16x128xf32>
    %cst_37 = arith.constant dense<0xFF800000> : vector<128xf32>
    %76 = vector.multi_reduction <maximumf>, %75, %cst_37 [0] : vector<16x128xf32> to vector<128xf32>
    %77 = vector.shape_cast %76 : vector<128xf32> to vector<1x128xf32>
    %78 = vector.extract_strided_slice %68 {offsets = [48, 0], sizes = [16, 128], strides = [1, 1]} : vector<128x128xf32> to vector<16x128xf32>
    %cst_38 = arith.constant dense<0xFF800000> : vector<128xf32>
    %79 = vector.multi_reduction <maximumf>, %78, %cst_38 [0] : vector<16x128xf32> to vector<128xf32>
    %80 = vector.shape_cast %79 : vector<128xf32> to vector<1x128xf32>
    %81 = vector.extract_strided_slice %68 {offsets = [64, 0], sizes = [16, 128], strides = [1, 1]} : vector<128x128xf32> to vector<16x128xf32>
    %cst_39 = arith.constant dense<0xFF800000> : vector<128xf32>
    %82 = vector.multi_reduction <maximumf>, %81, %cst_39 [0] : vector<16x128xf32> to vector<128xf32>
    %83 = vector.shape_cast %82 : vector<128xf32> to vector<1x128xf32>
    %84 = vector.extract_strided_slice %68 {offsets = [80, 0], sizes = [16, 128], strides = [1, 1]} : vector<128x128xf32> to vector<16x128xf32>
    %cst_40 = arith.constant dense<0xFF800000> : vector<128xf32>
    %85 = vector.multi_reduction <maximumf>, %84, %cst_40 [0] : vector<16x128xf32> to vector<128xf32>
    %86 = vector.shape_cast %85 : vector<128xf32> to vector<1x128xf32>
    %87 = vector.extract_strided_slice %68 {offsets = [96, 0], sizes = [16, 128], strides = [1, 1]} : vector<128x128xf32> to vector<16x128xf32>
    %cst_41 = arith.constant dense<0xFF800000> : vector<128xf32>
    %88 = vector.multi_reduction <maximumf>, %87, %cst_41 [0] : vector<16x128xf32> to vector<128xf32>
    %89 = vector.shape_cast %88 : vector<128xf32> to vector<1x128xf32>
    %90 = vector.extract_strided_slice %68 {offsets = [112, 0], sizes = [16, 128], strides = [1, 1]} : vector<128x128xf32> to vector<16x128xf32>
    %cst_42 = arith.constant dense<0xFF800000> : vector<128xf32>
    %91 = vector.multi_reduction <maximumf>, %90, %cst_42 [0] : vector<16x128xf32> to vector<128xf32>
    %92 = vector.shape_cast %91 : vector<128xf32> to vector<1x128xf32>
    %93 = tpu.concatenate %71, %74, %77, %80, %83, %86, %89, %92 in 0 : vector<1x128xf32>, vector<1x128xf32>, vector<1x128xf32>, vector<1x128xf32>, vector<1x128xf32>, vector<1x128xf32>, vector<1x128xf32>, vector<1x128xf32> -> vector<8x128xf32>
    %94 = arith.truncf %93 : vector<8x128xf32> to vector<8x128xbf16>
    %c0_43 = arith.constant 0 : index
    %c0_44 = arith.constant 0 : index
    %95 = vector.load %arg5[%c0_43, %c0_44] : memref<128x128xbf16, #tpu.memory_space<vmem>>, vector<128x128xbf16>
    %cst_45 = arith.constant dense<0.000000e+00> : vector<8x128xf32>
    %96 = tpu.matmul %94, %95, %cst_45 {dimension_numbers = #tpu.dot_dimension_numbers<[1], [0], [0], [1], [0, 0, 1, 1], [], []>} : vector<8x128xbf16>, vector<128x128xbf16>, vector<8x128xf32> -> vector<8x128xf32>
    %c0_46 = arith.constant 0 : index
    %c0_47 = arith.constant 0 : index
    %97 = vector.load %arg6[%c0_46, %c0_47] : memref<1x128xf32, #tpu.memory_space<vmem>>, vector<1x128xf32>
    %98 = vector.broadcast %97 : vector<1x128xf32> to vector<8x128xf32>
    %99 = arith.addf %96, %98 : vector<8x128xf32>
    %c0_48 = arith.constant 0 : index
    %c0_49 = arith.constant 0 : index
    %100 = vector.load %arg7[%c0_48, %c0_49] : memref<8x128xf32, #tpu.memory_space<vmem>>, vector<8x128xf32>
    tpu.vector_store %arg7[%c0_48, %c0_49], %99 {strides = array<i32>} : memref<8x128xf32, #tpu.memory_space<vmem>>, vector<8x128xf32>,
    return
  }
  func.func @transform_0(%arg0: i32) -> (i32, i32, i32) {
    %c0_i32 = arith.constant 0 : i32
    %c0_i32_0 = arith.constant 0 : i32
    %c0_i32_1 = arith.constant 0 : i32
    return %arg0, %c0_i32, %c0_i32_0 : i32, i32, i32
  }
  func.func @transform_1(%arg0: i32) -> (i32, i32) {
    %c0_i32 = arith.constant 0 : i32
    %c0_i32_0 = arith.constant 0 : i32
    return %arg0, %c0_i32 : i32, i32
  }
  func.func @transform_2(%arg0: i32) -> (i32, i32, i32) {
    %c0_i32 = arith.constant 0 : i32
    %c0_i32_0 = arith.constant 0 : i32
    %c0_i32_1 = arith.constant 0 : i32
    %c0_i32_2 = arith.constant 0 : i32
    return %c0_i32, %c0_i32_0, %c0_i32_1 : i32, i32, i32
  }
  func.func @transform_3(%arg0: i32) -> (i32, i32, i32) {
    %c0_i32 = arith.constant 0 : i32
    %c0_i32_0 = arith.constant 0 : i32
    %c0_i32_1 = arith.constant 0 : i32
    %c0_i32_2 = arith.constant 0 : i32
    return %c0_i32, %c0_i32_0, %c0_i32_1 : i32, i32, i32
  }
  func.func @transform_4(%arg0: i32) -> (i32, i32) {
    %c0_i32 = arith.constant 0 : i32
    %c0_i32_0 = arith.constant 0 : i32
    %c0_i32_1 = arith.constant 0 : i32
    return %c0_i32, %c0_i32_0 : i32, i32
  }
  func.func @transform_5(%arg0: i32) -> (i32, i32) {
    %c0_i32 = arith.constant 0 : i32
    %c0_i32_0 = arith.constant 0 : i32
    %c0_i32_1 = arith.constant 0 : i32
    return %c0_i32, %c0_i32_0 : i32, i32
  }
  func.func @transform_6(%arg0: i32) -> (i32, i32) {
    %c0_i32 = arith.constant 0 : i32
    %c0_i32_0 = arith.constant 0 : i32
    return %arg0, %c0_i32 : i32, i32
  }
}

</mosaic_0001>

<bundles_post_ra>
// kernel: gcn_forward.1
= control target key start
LH: loop header
LB: loop body
LE: loop exit
PB: predicated region body
PF: predicated region fallthrough
CT: control target
= control target key end

     0   :  { %v1517_v33 = vmov 1065369472   ;;  %s2542_s0 = inlined_call_operand.vmem [shape: bf16[1,128,128], index: 0, kind: input, shape index: {}]   ;;  %s2543_s1 = inlined_call_operand.vmem [shape: f32[128,128], index: 1, kind: input, shape index: {}]   ;;  %s2544_s2 = inlined_call_operand.vmem [shape: bf16[3,128,128], index: 2, kind: input, shape index: {}]   ;;  %s2545_s3 = inlined_call_operand.vmem [shape: f32[3,1,128], index: 3, kind: input, shape index: {}]   ;;  %s2546_s5 = inlined_call_operand.vmem [shape: f32[1,128], index: 5, kind: input, shape index: {}]   ;;  %s2547_s4 = inlined_call_operand.vmem [shape: bf16[128,128], index: 4, kind: input, shape index: {}]   ;;  %s2548_s6 = inlined_call_operand.vmem [shape: f32[8,128], index: 6, kind: output, shape index: {}]  }
   0x1   :  { %v1429_v0 = vld [vmem:[%s2542_s0 + $0x38] sm:$0xff]  ;;  %v1559_v1 = vld [vmem:[%s2542_s0] sm:$0xff]   ;;  %v1428_v3 = vld [vmem:[%s2542_s0 + $0x30] sm:$0xff] }
   0x2   :  { %168 = vmatpush.bf16.xpose.msra.mxu0 %v1429_v0  ;;  %v2562_v2 = vunpack.c.l.bf16 %v1559_v1  ;;  %v1570_v4 = vld [vmem:[%s2542_s0 + $0x10] sm:$0xff]   ;;  %v1575_v5 = vld [vmem:[%s2542_s0 + $0x8] sm:$0xff]   ;;  %v2561_v8 = vunpack.c.h.bf16 %v1559_v1  ;;  %v1592_v10 = vld [vmem:[%s2542_s0 + $0x18] sm:$0xff]  }
   0x3   :  { %v2556_v6 = vunpack.c.l.bf16 %v1570_v4  ;;  %v2557_v7 = vunpack.c.l.bf16 %v1575_v5  ;;  %v1427_v9 = vld [vmem:[%s2542_s0 + $0x28] sm:$0xff]  ;;  %v2555_v11 = vunpack.c.h.bf16 %v1570_v4  ;;  %v2560_v12 = vunpack.c.h.bf16 %v1575_v5  ;;  %v1426_v14 = vld [vmem:[%s2542_s0 + $0x20] sm:$0xff]  ;;  %v1609_v15 = vld [vmem:[%s2542_s0 + $0x30] sm:$0xff]  }
   0x4   :  { %72 = vadd.xlane.f32.xlu0 %v2562_v2  ;;  %v2554_v13 = vunpack.c.l.bf16 %v1592_v10  ;;  %v68_v16 = vunpack.c.l.bf16 %v1609_v15  ;;  %v2553_v17 = vunpack.c.h.bf16 %v1592_v10  ;;  %v2563_v18 = vunpack.c.h.bf16 %v1609_v15  ;;  %v1425_v19 = vld [vmem:[%s2542_s0 + $0x18] sm:$0xff]  ;;  %v1626_v20 = vld [vmem:[%s2542_s0 + $0x24] sm:$0xff]   ;;  %v1631_v21 = vld [vmem:[%s2542_s0 + $0x20] sm:$0xf] }
   0x5   :  { %80 = vadd.xlane.f32.xlu2 %v2556_v6  ;;  %76 = vadd.xlane.f32.xlu1 %v2557_v7  ;;  %v1636_v22 = vld [vmem:[%s2542_s0 + $0x38] sm:$0xff]   ;;  %v2551_v23 = vunpack.c.l.bf16 %v1626_v20  ;;  %v2552_v24 = vunpack.c.l.bf16 %v1631_v21  ;;  %v1650_v26 = vld [vmem:[%s2542_s0 + $0x2c] sm:$0xf]  ;;  %v1424_v27 = vld [vmem:[%s2542_s0 + $0x10] sm:$0xff]  ;;  %v2550_v28 = vunpack.c.h.bf16 %v1626_v20 }
   0x6   :  { %v2559_v25 = vunpack.c.l.bf16 %v1636_v22  ;;  %v2558_v29 = vunpack.c.h.bf16 %v1636_v22  ;;  %v2549_v30 = vunpack.c.l.bf16 %v1650_v26  ;;  %v1423_v31 = vld [vmem:[%s2542_s0 + $0x8] sm:$0xff]  ;;  %v1422_v32 = vld [vmem:[%s2542_s0] sm:$0xff]  ;;  %v1675_v36 = vld [vmem:[%s2543_s1 + $0x70] sm:$0xff] }
   0x7   :  { %v1680_v37 = vld [vmem:[%s2543_s1 + $0x78] sm:$0xff]  ;;  %v1689_v42 = vld [vmem:[%s2543_s1 + $0x60] sm:$0xff]  ;;  %v1694_v43 = vld [vmem:[%s2543_s1 + $0x68] sm:$0xff] }
   0x8   :  { %v432_v38 = vpack.c.bf16 %v1680_v37, %v1675_v36  ;;  %v431_v46 = vpack.c.bf16 %v1694_v43, %v1689_v42  ;;  %v1707_v48 = vld [vmem:[%s2543_s1 + $0x50] sm:$0xff]  ;;  %v1712_v49 = vld [vmem:[%s2543_s1 + $0x58] sm:$0xff]  ;;  %v1717_v50 = vld [vmem:[%s2543_s1 + $0x40] sm:$0xff] }
   0x9   :  { %v1722_v51 = vld [vmem:[%s2543_s1 + $0x48] sm:$0xff]  ;;  %v430_v53 = vpack.c.bf16 %v1712_v49, %v1707_v48  ;;  %v1731_v60 = vld [vmem:[%s2543_s1 + $0x30] sm:$0xff]  ;;  %v1736_v61 = vld [vmem:[%s2543_s1 + $0x38] sm:$0xff] }
   0xa   :  { %169 = vmatpush.bf16.xpose.msra.mxu0 %v1428_v3  ;;  %449 = vmatpush.bf16.msra.mxu1 %v432_v38  ;;  %v429_v58 = vpack.c.bf16 %v1722_v51, %v1717_v50 }
   0xb   :  { %1462 = vmatpush.bf16.msra.mxu3 %v432_v38 }
   0xc   :  { %74 = vadd.xlane.f32.xlu0 %v2561_v8 }
   0xd   :  { %82 = vadd.xlane.f32.xlu2 %v2555_v11  ;;  %78 = vadd.xlane.f32.xlu1 %v2560_v12 }
   0xe   :  { %450 = vmatpush.bf16.msra.mxu1 %v431_v46 }
   0xf   :  { %1463 = vmatpush.bf16.msra.mxu3 %v431_v46 }
  0x12   :  { %170 = vmatpush.bf16.xpose.msra.mxu0 %v1427_v9  ;;  %451 = vmatpush.bf16.msra.mxu1 %v430_v53  ;;  %v428_v9 = vpack.c.bf16 %v1736_v61, %v1731_v60 }
  0x13   :  { %1464 = vmatpush.bf16.msra.mxu3 %v430_v53 }
  0x14   :  { %84 = vadd.xlane.f32.xlu0 %v2554_v13 }
  0x15   :  { %96 = vadd.xlane.f32.xlu2 %v68_v16  ;;  %86 = vadd.xlane.f32.xlu1 %v2553_v17 }
  0x16   :  { %452 = vmatpush.bf16.msra.mxu1 %v429_v58 }
  0x17   :  { %1465 = vmatpush.bf16.msra.mxu3 %v429_v58  ;;  %v1789_v58 = vld [vmem:[%s2543_s1] sm:$0xff] }
  0x1a   :  { %171 = vmatpush.bf16.xpose.msra.mxu0 %v1426_v14  ;;  %453 = vmatpush.bf16.msra.mxu1 %v428_v9 }
  0x1b   :  { %1466 = vmatpush.bf16.msra.mxu3 %v428_v9 }
  0x1c   :  { %98 = vadd.xlane.f32.xlu0 %v2563_v18 }
  0x1d   :  { %90 = vadd.xlane.f32.xlu2 %v2551_v23  ;;  %88 = vadd.xlane.f32.xlu1 %v2552_v24 }
  0x22   :  { %172 = vmatpush.bf16.xpose.msra.mxu0 %v1425_v19  ;;  %v1753_v19 = vld [vmem:[%s2543_s1 + $0x20] sm:$0xff] }
  0x24   :  { %100 = vadd.xlane.f32.xlu0 %v2559_v25 }
  0x25   :  { %92 = vadd.xlane.f32.xlu2 %v2550_v28  ;;  %102 = vadd.xlane.f32.xlu1 %v2558_v29 }
  0x2a   :  { %173 = vmatpush.bf16.xpose.msra.mxu0 %v1424_v27  ;;  %v1758_v27 = vld [vmem:[%s2543_s1 + $0x28] sm:$0xff] }
  0x2c   :  { %94 = vadd.xlane.f32.xlu0 %v2549_v30 }
  0x32   :  { %174 = vmatpush.bf16.xpose.msra.mxu0 %v1423_v31  ;;  %v427_v31 = vpack.c.bf16 %v1758_v27, %v1753_v19 }
  0x34   :  { %454 = vmatpush.bf16.msra.mxu1 %v427_v31  ;;  %1467 = vmatpush.bf16.msra.mxu3 %v427_v31 }
  0x3a   :  { %175 = vmatpush.bf16.xpose.msra.mxu0 %v1422_v32  ;;  %v1769_v32 = vld [vmem:[%s2543_s1 + $0x18] sm:$0xff] }
  0x41   :  { %176 = vmatmul.bf16.vlgmr.msra.gmra.mxu0 %v1517_v33  ;;  %v1774_v33 = vld [vmem:[%s2543_s1 + $0x10] sm:$0xff] }
  0x77   :  { %v73_v34 = vpop.xlane.xlu0 %72 }
  0x78   :  { %v1670_v35 = vpop.xlane.xlu1 %76  ;;  %v1684_v39 = vpop.xlane.xlu2 %80  ;;  %v104_v52 = vadd.f32 1.0, %v73_v34 }
  0x79   :  { %v106_v9 = vadd.f32 1.0, %v1670_v35 }
  0x7a   :  { %v1738_v62 = vadd.f32 1e-05, %v104_v52 }
  0x7b   :  { %v1813_v23 = vadd.f32 1e-05, %v106_v9 }
  0x7c   :  { %1483 = vrsqrt.f32 %v1738_v62  ;;  %vm203_vm0 = vweird.f32 %v1738_v62 }
  0x7d   :  { %vm223_vm14 = vweird.f32 %v1813_v23 }
  0x7f   :  { %v75_v40 = vpop.xlane.xlu0 %74 }
  0x80   :  { %v79_v41 = vpop.xlane.xlu1 %78  ;;  %v1696_v44 = vpop.xlane.xlu2 %82  ;;  %v105_v54 = vadd.f32 1.0, %v75_v40  ;;  %v426_v40 = vpack.c.bf16 %v1769_v32, %v1774_v33 }
  0x81   :  { %v107_v52 = vadd.f32 1.0, %v79_v41  ;;  %v109_v7 = vadd.f32 1.0, %v1696_v44 }
  0x82   :  { %v1742_v0 = vadd.f32 1e-05, %v105_v54  ;;  %v1776_v34 = vpop.eup %1483  ;;  %455 = vmatpush.bf16.msra.mxu1 %v426_v40  ;;  %1468 = vmatpush.bf16.msra.mxu3 %v426_v40 }
  0x83   :  { %v198_v31 = vmul.f32 %v1776_v34, %v1738_v62  ;;  %vm204_vm1 = vweird.f32 %v1776_v34  ;;  %v1867_v18 = vadd.f32 1e-05, %v109_v7 }
  0x84   :  { %1485 = vrsqrt.f32 %v1742_v0  ;;  %vm1853_vm6 = vmor %vm203_vm0, %vm204_vm1  ;;  %vm213_vm7 = vweird.f32 %v1742_v0 }
  0x87   :  { %v1698_v45 = vpop.xlane.xlu0 %84 }
  0x88   :  { %v1702_v47 = vpop.xlane.xlu1 %86  ;;  %v97_v55 = vpop.xlane.xlu2 %96 }
  0x89   :  { %v116_v56 = vadd.f32 1.0, %v97_v55 }
  0x8a   :  { %v1780_v46 = vpop.eup %1485 }
  0x8b   :  { %v1744_v3 = vadd.f32 1e-05, %v116_v56  ;;  %vm214_vm8 = vweird.f32 %v1780_v46 }
  0x8c   :  { %vm215_vm11 = vmor %vm213_vm7, %vm214_vm8 }
  0x8d   :  { %1487 = vrsqrt.f32 %v1744_v3  ;;  %vm323_vm2 = vweird.f32 %v1744_v3 }
  0x8f   :  { %v99_v57 = vpop.xlane.xlu0 %98 }
  0x90   :  { %v117_v59 = vadd.f32 1.0, %v99_v57  ;;  %v1740_v63 = vpop.xlane.xlu1 %88 }
  0x92   :  { %v1748_v14 = vadd.f32 1e-05, %v117_v59  ;;  %v1794_v59 = vld [vmem:[%s2543_s1 + $0x8] sm:$0xff] }
  0x93   :  { %v1782_v54 = vpop.eup %1487  ;;  %v425_v41 = vpack.c.bf16 %v1794_v59, %v1789_v58 }
  0x94   :  { %1489 = vrsqrt.f32 %v1748_v14  ;;  %v318_v30 = vmul.f32 %v1782_v54, %v1744_v3  ;;  %vm324_vm3 = vweird.f32 %v1782_v54  ;;  %vm333_vm4 = vweird.f32 %v1748_v14 }
  0x95   :  { %456 = vmatpush.bf16.msra.mxu1 %v425_v41  ;;  %1469 = vmatpush.bf16.msra.mxu3 %v425_v41  ;;  %vm325_vm9 = vmor %vm323_vm2, %vm324_vm3 }
  0x96   :  { %v319_v11 = vmul.f32 %v1782_v54, %v318_v30 }
  0x97   :  { %v101_v53 = vpop.xlane.xlu0 %100 }
  0x98   :  { %v103_v38 = vpop.xlane.xlu1 %102  ;;  %v118_v55 = vadd.f32 1.0, %v101_v53  ;;  %v208_v53 = vmul.f32 %v1780_v46, %v1742_v0  ;;  %v320_v41 = vmul.f32 0.5, %v319_v11 }
  0x99   :  { %v119_v57 = vadd.f32 1.0, %v103_v38  ;;  %v1801_v38 = vadd.f32 1e-05, %v107_v52  ;;  %v199_v52 = vmul.f32 %v1776_v34, %v198_v31 }
  0x9a   :  { %v1784_v56 = vpop.eup %1489  ;;  %v1809_v35 = vadd.f32 1e-05, %v118_v55  ;;  %v209_v13 = vmul.f32 %v1780_v46, %v208_v53 }
  0x9b   :  { %v328_v28 = vmul.f32 %v1784_v56, %v1748_v14  ;;  %v1811_v40 = vadd.f32 1e-05, %v119_v57  ;;  %1491 = vrsqrt.f32 %v1801_v38  ;;  %v200_v57 = vmul.f32 0.5, %v199_v52 }
  0x9c   :  { %1493 = vrsqrt.f32 %v1809_v35  ;;  %v210_v9 = vmul.f32 0.5, %v209_v13  ;;  %vm334_vm5 = vweird.f32 %v1784_v56  ;;  %vm233_vm0 = vweird.f32 %v1801_v38 }
  0x9d   :  { %v329_v6 = vmul.f32 %v1784_v56, %v328_v28  ;;  %1495 = vrsqrt.f32 %v1811_v40  ;;  %v201_v13 = vsub.f32 1.5, %v200_v57  ;;  %vm335_vm10 = vmor %vm333_vm4, %vm334_vm5  ;;  %vm343_vm2 = vweird.f32 %v1809_v35 }
  0x9e   :  { %1497 = vrsqrt.f32 %v1813_v23  ;;  %v211_v11 = vsub.f32 1.5, %v210_v9  ;;  %vm353_vm4 = vweird.f32 %v1811_v40 }
  0x9f   :  { %v202_v62 = vmul.f32 %v1776_v34, %v201_v13 }
  0xa0   :  { %v212_v2 = vmul.f32 %v1780_v46, %v211_v11 }
  0xa1   :  { %v1826_v31 = vpop.eup %1491  ;;  %v1887_v14 = vsel %vm1853_vm6, %v1776_v34, %v202_v62 }
  0xa2   :  { %v1828_v53 = vpop.eup %1493  ;;  %vm234_vm1 = vweird.f32 %v1826_v31 }
  0xa3   :  { %v1830_v28 = vpop.eup %1495  ;;  %vm344_vm3 = vweird.f32 %v1828_v53  ;;  %vm1931_vm7 = vmor %vm233_vm0, %vm234_vm1 }
  0xa4   :  { %v1836_v29 = vpop.eup %1497  ;;  %v348_v44 = vmul.f32 %v1830_v28, %v1811_v40  ;;  %vm354_vm5 = vweird.f32 %v1830_v28  ;;  %vm345_vm8 = vmor %vm343_vm2, %vm344_vm3 }
  0xa5   :  { %vm224_vm6 = vweird.f32 %v1836_v29 }
  0xbe   :  { %v177_v24 = vpop.f32.mrf.mxu0 }
  0xbf   :  { %v178_v17 = vadd.f32 1.0, %v177_v24  ;;  %v330_v24 = vmul.f32 0.5, %v329_v6  ;;  %v321_v6 = vsub.f32 1.5, %v320_v41  ;;  %v218_v41 = vmul.f32 %v1836_v29, %v1813_v23 }
  0xc0   :  { %v2574_v23 = vunpack.c.h.bf16 %v1575_v5 }
  0xc1   :  { %v1822_v55 = vadd.f32 1e-05, %v178_v17  ;;  %v108_v17 = vadd.f32 1.0, %v1684_v39  ;;  %v331_v52 = vsub.f32 1.5, %v330_v24  ;;  %v338_v39 = vmul.f32 %v1828_v53, %v1809_v35 }
  0xc2   :  { %v322_v24 = vmul.f32 %v1782_v54, %v321_v6  ;;  %v349_v6 = vmul.f32 %v1830_v28, %v348_v44  ;;  %v219_v13 = vmul.f32 %v1836_v29, %v218_v41 }
  0xc3   :  { %1499 = vrsqrt.f32 %v1822_v55  ;;  %v1857_v9 = vadd.f32 1e-05, %v108_v17  ;;  %v332_v12 = vmul.f32 %v1784_v56, %v331_v52  ;;  %v339_v0 = vmul.f32 %v1828_v53, %v338_v39 }
  0xc4   :  { %v1879_v7 = vsel %vm325_vm9, %v1782_v54, %v322_v24  ;;  %v1890_v39 = vsel %vm215_vm11, %v1780_v46, %v212_v2  ;;  %vm364_vm13 = vweird.f32 %v1822_v55  ;;  %v2569_v2 = vunpack.c.h.bf16 %v1609_v15  ;;  %vm355_vm9 = vmor %vm353_vm4, %vm354_vm5 }
  0xc5   :  { %1501 = vrsqrt.f32 %v1857_v9  ;;  %v1882_v11 = vsel %vm335_vm10, %v1784_v56, %v332_v12  ;;  %v340_v44 = vmul.f32 0.5, %v339_v0  ;;  %v110_v12 = vadd.f32 1.0, %v1698_v45  ;;  %vm225_vm10 = vmor %vm223_vm14, %vm224_vm6 }
  0xc6   :  { %v179_v30 = vpop.f32.mrf.mxu0  ;;  %1503 = vrsqrt.f32 %v1867_v18  ;;  %v396_v34 = vmul.f32 %v1879_v7, %v68_v16  ;;  %v397_v46 = vmul.f32 %v1882_v11, %v2569_v2  ;;  %v220_v56 = vmul.f32 0.5, %v219_v13 }
  0xc7   :  { %v228_v30 = vmul.f32 %v1826_v31, %v1801_v38  ;;  %v2570_v45 = vunpack.c.l.bf16 %v1559_v1  ;;  %v2571_v16 = vunpack.c.h.bf16 %v1559_v1  ;;  %vm243_vm11 = vweird.f32 %v1857_v9 }
  0xc9   :  { %v1500_v25 = vpop.eup %1499  ;;  %v229_v17 = vmul.f32 %v1826_v31, %v228_v30  ;;  %v384_v62 = vmul.f32 %v1887_v14, %v2570_v45  ;;  %v385_v15 = vmul.f32 %v1890_v39, %v2571_v16 }
  0xca   :  { %v359_v57 = vmul.f32 %v1500_v25, %v1822_v55  ;;  %vm365_vm12 = vweird.f32 %v1500_v25 }
  0xcb   :  { %vm366_vm15 = vmor %vm364_vm13, %vm365_vm12  ;;  %v1904_v55 = vpop.eup %1501  ;;  %vm253_vm13 = vweird.f32 %v1867_v18 }
  0xcc   :  { %v360_v8 = vmul.f32 %v1500_v25, %v359_v57  ;;  %v350_v57 = vmul.f32 0.5, %v349_v6  ;;  %v238_v1 = vmul.f32 %v1904_v55, %v1857_v9  ;;  %vm244_vm12 = vweird.f32 %v1904_v55 }
  0xce   :  { %v361_v52 = vmul.f32 0.5, %v360_v8  ;;  %v230_v8 = vmul.f32 0.5, %v229_v17  ;;  %v341_v17 = vsub.f32 1.5, %v340_v44  ;;  %v351_v0 = vsub.f32 1.5, %v350_v57 }
  0xcf   :  { %v111_v57 = vadd.f32 1.0, %v1702_v47 }
  0xd0   :  { %v362_v30 = vsub.f32 1.5, %v361_v52  ;;  %v231_v41 = vsub.f32 1.5, %v230_v8  ;;  %v221_v8 = vsub.f32 1.5, %v220_v56  ;;  %v352_v38 = vmul.f32 %v1830_v28, %v351_v0 }
  0xd1   :  { %v1952_v56 = vadd.f32 1e-05, %v110_v12  ;;  %v1959_v35 = vadd.f32 1e-05, %v111_v57 }
  0xd2   :  { %v363_v54 = vmul.f32 %v1500_v25, %v362_v30  ;;  %v232_v2 = vmul.f32 %v1826_v31, %v231_v41  ;;  %v222_v47 = vmul.f32 %v1836_v29, %v221_v8  ;;  %v1971_v12 = vsel %vm355_vm9, %v1830_v28, %v352_v38 }
  0xd3   :  { %1505 = vrsqrt.f32 %v1952_v56  ;;  %vm263_vm1 = vweird.f32 %v1952_v56  ;;  %vm273_vm3 = vweird.f32 %v1959_v35 }
  0xd4   :  { %v367_v3 = vsel %vm366_vm15, %v1500_v25, %v363_v54  ;;  %v1916_v25 = vpop.eup %1503  ;;  %v1965_v45 = vsel %vm1931_vm7, %v1826_v31, %v232_v2  ;;  %v1974_v16 = vsel %vm225_vm10, %v1836_v29, %v222_v47  ;;  %1507 = vrsqrt.f32 %v1959_v35  ;;  %v91_v2 = vpop.xlane.xlu2 %90  ;;  %vm245_vm15 = vmor %vm243_vm11, %vm244_vm12 }
  0xd5   :  { %v1906_v24 = vperm.slane %v367_v3, 0  ;;  %v248_v40 = vmul.f32 %v1916_v25, %v1867_v18  ;;  %v239_v3 = vmul.f32 %v1904_v55, %v238_v1  ;;  %v2575_v31 = vunpack.c.l.bf16 %v1636_v22 }
  0xd6   :  { %v2577_v29 = vunpack.c.l.bf16 %v1575_v5  ;;  %vm254_vm14 = vweird.f32 %v1916_v25  ;;  %v113_v5 = vadd.f32 1.0, %v91_v2 }
  0xd7   :  { %v401_v6 = vmul.f32 %v1906_v24, %v384_v62  ;;  %v402_v52 = vmul.f32 %v1906_v24, %v385_v15  ;;  %v413_v13 = vmul.f32 %v1906_v24, %v396_v34  ;;  %v414_v30 = vmul.f32 %v1906_v24, %v397_v46  ;;  %vm255_vm0 = vmor %vm253_vm13, %vm254_vm14 }
  0xd8   :  { %v342_v46 = vmul.f32 %v1828_v53, %v341_v17  ;;  %v249_v41 = vmul.f32 %v1916_v25, %v248_v40  ;;  %v387_v15 = vmul.f32 %v1965_v45, %v2574_v23  ;;  %v240_v0 = vmul.f32 0.5, %v239_v3 }
  0xd9   :  { %v1936_v54 = vpack.c.bf16 %v402_v52, %v401_v6  ;;  %v1938_v34 = vpack.c.bf16 %v414_v30, %v413_v13  ;;  %v386_v52 = vmul.f32 %v1974_v16, %v2577_v29  ;;  %v1506_v44 = vpop.eup %1505  ;;  %v190_v18 = vadd.f32 1e-05, %v113_v5 }
  0xda   :  { %v1968_v62 = vsel %vm345_vm8, %v1828_v53, %v342_v46  ;;  %v2576_v53 = vunpack.c.h.bf16 %v1636_v22  ;;  %v250_v6 = vmul.f32 0.5, %v249_v41  ;;  %v404_v30 = vmul.f32 %v1906_v24, %v387_v15  ;;  %v1508_v22 = vpop.eup %1507 }
  0xdb   :  { %457 = vmatmul.bf16.vlgmr.msra.gmra.mxu1 %v1936_v54  ;;  %487 = vmatmul.bf16.vlgmr.msra.gmra.mxu3 %v1938_v34  ;;  %v398_v17 = vmul.f32 %v1968_v62, %v2575_v31  ;;  %v403_v13 = vmul.f32 %v1906_v24, %v386_v52  ;;  %v241_v57 = vsub.f32 1.5, %v240_v0  ;;  %v112_v46 = vadd.f32 1.0, %v1740_v63 }
  0xdc   :  { %v399_v28 = vmul.f32 %v1971_v12, %v2576_v53  ;;  %v251_v40 = vsub.f32 1.5, %v250_v6  ;;  %v258_v9 = vmul.f32 %v1506_v44, %v1952_v56  ;;  %v268_v23 = vmul.f32 %v1508_v22, %v1959_v35 }
  0xdd   :  { %v415_v1 = vmul.f32 %v1906_v24, %v398_v17  ;;  %v1999_v38 = vpack.c.bf16 %v404_v30, %v403_v13  ;;  %v242_v3 = vmul.f32 %v1904_v55, %v241_v57  ;;  %v189_v63 = vadd.f32 1e-05, %v112_v46  ;;  %v93_v30 = vpop.xlane.xlu2 %92 }
  0xde   :  { %v416_v8 = vmul.f32 %v1906_v24, %v399_v28  ;;  %v252_v41 = vmul.f32 %v1916_v25, %v251_v40  ;;  %v259_v17 = vmul.f32 %v1506_v44, %v258_v9  ;;  %v269_v53 = vmul.f32 %v1508_v22, %v268_v23  ;;  %v95_v40 = vpop.xlane.xlu0 %94 }
  0xdf   :  { %v2010_v15 = vsel %vm245_vm15, %v1904_v55, %v242_v3  ;;  %1509 = vrsqrt.f32 %v190_v18  ;;  %v2578_v28 = vunpack.c.l.bf16 %v1570_v4  ;;  %v2579_v6 = vunpack.c.h.bf16 %v1570_v4 }
  0xe0   :  { %v2001_v47 = vpack.c.bf16 %v416_v8, %v415_v1  ;;  %v2013_v31 = vsel %vm255_vm0, %v1916_v25, %v252_v41  ;;  %1511 = vrsqrt.f32 %v189_v63  ;;  %v260_v52 = vmul.f32 0.5, %v259_v17 }
  0xe1   :  { %v388_v0 = vmul.f32 %v2010_v15, %v2578_v28  ;;  %v389_v29 = vmul.f32 %v2013_v31, %v2579_v6  ;;  %v270_v13 = vmul.f32 0.5, %v269_v53  ;;  %vm264_vm2 = vweird.f32 %v1506_v44 }
  0xe2   :  { %v261_v8 = vsub.f32 1.5, %v260_v52  ;;  %vm274_vm4 = vweird.f32 %v1508_v22  ;;  %v114_v4 = vadd.f32 1.0, %v93_v30  ;;  %v115_v5 = vadd.f32 1.0, %v95_v40  ;;  %vm265_vm5 = vmor %vm263_vm1, %vm264_vm2 }
  0xe3   :  { %v405_v55 = vmul.f32 %v1906_v24, %v388_v0  ;;  %v406_v25 = vmul.f32 %v1906_v24, %v389_v29  ;;  %v271_v57 = vsub.f32 1.5, %v270_v13  ;;  %vm275_vm6 = vmor %vm273_vm3, %vm274_vm4  ;;  %v2580_v6 = vunpack.c.l.bf16 %v1592_v10 }
  0xe4   :  { %v262_v3 = vmul.f32 %v1506_v44, %v261_v8  ;;  %v191_v17 = vadd.f32 1e-05, %v114_v4  ;;  %v2028_v53 = vadd.f32 1e-05, %v115_v5  ;;  %v2581_v52 = vunpack.c.h.bf16 %v1592_v10 }
  0xe5   :  { %v1510_v1 = vpop.eup %1509  ;;  %v2025_v46 = vpack.c.bf16 %v406_v25, %v405_v55  ;;  %v272_v41 = vmul.f32 %v1508_v22, %v271_v57  ;;  %vm293_vm7 = vweird.f32 %v190_v18  ;;  %vm283_vm9 = vweird.f32 %v189_v63 }
  0xe6   :  { %v1512_v2 = vpop.eup %1511  ;;  %v288_v9 = vmul.f32 %v1510_v1, %v190_v18  ;;  %v2030_v56 = vsel %vm265_vm5, %v1506_v44, %v262_v3  ;;  %1513 = vrsqrt.f32 %v191_v17  ;;  %vm294_vm8 = vweird.f32 %v1510_v1  ;;  %v1436_v18 = vld [vmem:[%s2544_s2 + $0x30] sm:$0xff] }
  0xe7   :  { %v278_v23 = vmul.f32 %v1512_v2, %v189_v63  ;;  %v2032_v28 = vsel %vm275_vm6, %v1508_v22, %v272_v41  ;;  %1515 = vrsqrt.f32 %v2028_v53  ;;  %v390_v29 = vmul.f32 %v2030_v56, %v2580_v6  ;;  %vm295_vm11 = vmor %vm293_vm7, %vm294_vm8 }
  0xe8   :  { %v289_v35 = vmul.f32 %v1510_v1, %v288_v9  ;;  %v391_v13 = vmul.f32 %v2032_v28, %v2581_v52  ;;  %vm284_vm10 = vweird.f32 %v1512_v2  ;;  %v1437_v9 = vld [vmem:[%s2544_s2 + $0x38] sm:$0xff]  ;;  %v2582_v6 = vunpack.c.l.bf16 %v1631_v21  ;;  %v1434_v21 = vld [vmem:[%s2544_s2 + $0x20] sm:$0xff] }
  0xe9   :  { %v279_v0 = vmul.f32 %v1512_v2, %v278_v23  ;;  %v407_v44 = vmul.f32 %v1906_v24, %v390_v29  ;;  %vm285_vm12 = vmor %vm283_vm9, %vm284_vm10  ;;  %574 = vmatpush.bf16.msra.mxu2 %v1437_v9  ;;  %1470 = vmatpush.bf16.msrb.mxu3 %v1437_v9  ;;  %v2583_v52 = vunpack.c.l.bf16 %v1626_v20  ;;  %vm303_vm13 = vweird.f32 %v191_v17 }
  0xea   :  { %v290_v30 = vmul.f32 0.5, %v289_v35  ;;  %v408_v22 = vmul.f32 %v1906_v24, %v391_v13  ;;  %vm313_vm15 = vweird.f32 %v2028_v53  ;;  %vm1127_vm3 = vcmask 1040384  }
  0xeb   :  { %462 = vmatmul.bf16.gmra.mxu1 %v1999_v38  ;;  %492 = vmatmul.bf16.gmra.mxu3 %v2001_v47  ;;  %v280_v55 = vmul.f32 0.5, %v279_v0  ;;  %vm1129_vm4 = vcmask 1041408   ;;  %vm1131_vm5 = vcmask 1042432   ;;  %vm1133_vm6 = vcmask 1043456  }
  0xec   :  { %v1514_v25 = vpop.eup %1513  ;;  %v291_v8 = vsub.f32 1.5, %v290_v30  ;;  %v2043_v4 = vpack.c.bf16 %v408_v22, %v407_v44  ;;  %v1435_v30 = vld [vmem:[%s2544_s2 + $0x28] sm:$0xff]  ;;  %vm1135_vm7 = vcmask 1044480   ;;  %vm1137_vm8 = vcmask 1045504  }
  0xed   :  { %v281_v57 = vsub.f32 1.5, %v280_v55  ;;  %v1516_v40 = vpop.eup %1515  ;;  %v298_v3 = vmul.f32 %v1514_v25, %v191_v17  ;;  %575 = vmatpush.bf16.msra.mxu2 %v1436_v18  ;;  %1471 = vmatpush.bf16.msrb.mxu3 %v1436_v18  ;;  %vm304_vm14 = vweird.f32 %v1514_v25  ;;  %v2585_v18 = vunpack.c.l.bf16 %v1650_v26  ;;  %v1430_v26 = vld [vmem:[%s2544_s2] sm:$0xff] }
  0xee   :  { %v292_v5 = vmul.f32 %v1510_v1, %v291_v8  ;;  %v308_v41 = vmul.f32 %v1516_v40, %v2028_v53  ;;  %vm314_vm0 = vweird.f32 %v1516_v40  ;;  %vm305_vm1 = vmor %vm303_vm13, %vm304_vm14  ;;  %vm1139_vm9 = vcmask 1046528  }
  0xef   :  { %v282_v10 = vmul.f32 %v1512_v2, %v281_v57  ;;  %v299_v35 = vmul.f32 %v1514_v25, %v298_v3  ;;  %vm315_vm2 = vmor %vm313_vm15, %vm314_vm0 }
  0xf0   :  { %v2053_v63 = vsel %vm295_vm11, %v1510_v1, %v292_v5  ;;  %v309_v0 = vmul.f32 %v1516_v40, %v308_v41  ;;  %v1433_v5 = vld [vmem:[%s2544_s2 + $0x18] sm:$0xff]  ;;  %v2584_v41 = vunpack.c.h.bf16 %v1626_v20  ;;  %v1431_v20 = vld [vmem:[%s2544_s2 + $0x8] sm:$0xff] }
  0xf1   :  { %v2055_v23 = vsel %vm285_vm12, %v1512_v2, %v282_v10  ;;  %v393_v13 = vmul.f32 %v2053_v63, %v2583_v52  ;;  %v300_v1 = vmul.f32 0.5, %v299_v35  ;;  %576 = vmatpush.bf16.msra.mxu2 %v1435_v30  ;;  %1472 = vmatpush.bf16.msrb.mxu3 %v1435_v30  ;;  %v2108_v52 = vmul.f32 %v1887_v14, %v1887_v14 }
  0xf2   :  { %v392_v29 = vmul.f32 %v2055_v23, %v2582_v6  ;;  %v310_v55 = vmul.f32 0.5, %v309_v0 }
  0xf3   :  { %v410_v44 = vmul.f32 %v1906_v24, %v393_v13  ;;  %v301_v22 = vsub.f32 1.5, %v300_v1  ;;  %v433_v1 = vmul.f32 %v2108_v52, %v1789_v58 }
  0xf4   :  { %v409_v2 = vmul.f32 %v1906_v24, %v392_v29  ;;  %v311_v8 = vsub.f32 1.5, %v310_v55 }
  0xf5   :  { %577 = vmatpush.bf16.msra.mxu2 %v1434_v21  ;;  %1473 = vmatpush.bf16.msrb.mxu3 %v1434_v21  ;;  %v302_v10 = vmul.f32 %v1514_v25, %v301_v22 }
  0xf6   :  { %v2072_v57 = vpack.c.bf16 %v410_v44, %v409_v2  ;;  %v312_v3 = vmul.f32 %v1516_v40, %v311_v8  ;;  %v2116_v2 = vmul.f32 %v1882_v11, %v1882_v11 }
  0xf7   :  { %v2078_v17 = vsel %vm305_vm1, %v1514_v25, %v302_v10  ;;  %v1432_v25 = vld [vmem:[%s2544_s2 + $0x10] sm:$0xff] }
  0xf8   :  { %v2080_v53 = vsel %vm315_vm2, %v1516_v40, %v312_v3  ;;  %v394_v9 = vmul.f32 %v2078_v17, %v2584_v41  ;;  %v2104_v40 = vmul.f32 %v1890_v39, %v1890_v39  ;;  %v2120_v39 = vmul.f32 %v1879_v7, %v1879_v7 }
  0xf9   :  { %578 = vmatpush.bf16.msra.mxu2 %v1433_v5  ;;  %1474 = vmatpush.bf16.msrb.mxu3 %v1433_v5  ;;  %v395_v35 = vmul.f32 %v2080_v53, %v2585_v18  ;;  %v446_v22 = vmul.f32 %v2116_v2, %v1694_v43  ;;  %v2128_v3 = vmul.f32 %v1965_v45, %v1965_v45 }
  0xfa   :  { %v411_v0 = vmul.f32 %v1906_v24, %v394_v9  ;;  %v434_v30 = vmul.f32 %v2104_v40, %v1794_v59  ;;  %v445_v59 = vmul.f32 %v2120_v39, %v1689_v42  ;;  %v2132_v7 = vmul.f32 %v1974_v16, %v1974_v16 }
  0xfb   :  { %467 = vmatmul.bf16.gmra.mxu1 %v2025_v46  ;;  %v412_v6 = vmul.f32 %v1906_v24, %v395_v35  ;;  %v436_v43 = vmul.f32 %v2128_v3, %v1769_v32  ;;  %v2140_v35 = vmul.f32 %v1968_v62, %v1968_v62  ;;  %v2152_v62 = vmul.f32 %v2010_v15, %v2010_v15 }
  0xfc   :  { %v435_v42 = vmul.f32 %v2132_v7, %v1774_v33  ;;  %v2164_v15 = vmul.f32 %v2030_v56, %v2030_v56  ;;  %v2176_v56 = vmul.f32 %v2055_v23, %v2055_v23  ;;  %v2188_v23 = vmul.f32 %v2078_v17, %v2078_v17 }
  0xfd   :  { %v2090_v29 = vpack.c.bf16 %v412_v6, %v411_v0  ;;  %579 = vmatpush.bf16.msra.mxu2 %v1432_v25  ;;  %1475 = vmatpush.bf16.msrb.mxu3 %v1432_v25  ;;  %v2144_v0 = vmul.f32 %v1971_v12, %v1971_v12  ;;  %v447_v6 = vmul.f32 %v2140_v35, %v1675_v36 }
  0xfe   :  { %v2156_v12 = vmul.f32 %v2013_v31, %v2013_v31  ;;  %v437_v36 = vmul.f32 %v2152_v62, %v1753_v19  ;;  %v2168_v31 = vmul.f32 %v2032_v28, %v2032_v28  ;;  %v439_v19 = vmul.f32 %v2164_v15, %v1731_v60 }
  0xff   :  { %v448_v32 = vmul.f32 %v2144_v0, %v1680_v37  ;;  %v2180_v28 = vmul.f32 %v2053_v63, %v2053_v63  ;;  %v441_v60 = vmul.f32 %v2176_v56, %v1717_v50  ;;  %v2192_v63 = vmul.f32 %v2080_v53, %v2080_v53  ;;  %v1479_v53 = vld [vmem:[%s2545_s3] ss:$0 sm:$0xff] }
 0x100   :  { %v438_v37 = vmul.f32 %v2156_v12, %v1758_v27  ;;  %v440_v27 = vmul.f32 %v2168_v31, %v1736_v61  ;;  %v443_v50 = vmul.f32 %v2188_v23, %v1707_v48 }
 0x101   :  { %580 = vmatpush.bf16.msra.mxu2 %v1431_v20  ;;  %1476 = vmatpush.bf16.msrb.mxu3 %v1431_v20  ;;  %v442_v61 = vmul.f32 %v2180_v28, %v1722_v51  ;;  %v444_v51 = vmul.f32 %v2192_v63, %v1712_v49 }
 0x105   :  { %581 = vmatpush.bf16.msra.mxu2 %v1430_v26  ;;  %1477 = vmatpush.bf16.msrb.mxu3 %v1430_v26 }
 0x10b   :  { %472 = vmatmul.bf16.gmra.mxu1 %v2043_v4 }
 0x11b   :  { %477 = vmatmul.bf16.gmra.mxu1 %v2072_v57 }
 0x12b   :  { %482 = vmatmul.bf16.gmra.mxu1 %v2090_v29 }
 0x158   :  { %v458_v24 = vpop.f32.mrf.mxu1 }
 0x159   :  { %v459_v44 = vadd.f32 %v458_v24, %v433_v1 }
 0x15e   :  { %v488_v13 = vpop.f32.mrf.mxu3 }
 0x15f   :  { %v489_v8 = vadd.f32 %v488_v13, %v445_v59 }
 0x160   :  { %v460_v55 = vpop.f32.mrf.mxu1 }
 0x161   :  { %v461_v21 = vadd.f32 %v460_v55, %v434_v30 }
 0x163   :  { %v498_v14 = vpack.c.bf16 %v461_v21, %v459_v44 }
 0x165   :  { %582 = vmatmul.bf16.vlgmr.msra.gmra.mxu2 %v498_v14 }
 0x166   :  { %v490_v58 = vpop.f32.mrf.mxu3 }
 0x167   :  { %v491_v5 = vadd.f32 %v490_v58, %v446_v22 }
 0x168   :  { %v463_v10 = vpop.f32.mrf.mxu1 }
 0x169   :  { %v504_v11 = vpack.c.bf16 %v491_v5, %v489_v8  ;;  %v464_v18 = vadd.f32 %v463_v10, %v435_v42 }
 0x16b   :  { %612 = vmatmul.bf16.vlgmr.msrb.gmra.mxu3 %v504_v11 }
 0x16e   :  { %v493_v41 = vpop.f32.mrf.mxu3 }
 0x16f   :  { %v494_v25 = vadd.f32 %v493_v41, %v447_v6 }
 0x170   :  { %v465_v9 = vpop.f32.mrf.mxu1 }
 0x171   :  { %v466_v45 = vadd.f32 %v465_v9, %v436_v43 }
 0x173   :  { %v499_v16 = vpack.c.bf16 %v466_v45, %v464_v18 }
 0x175   :  { %587 = vmatmul.bf16.gmra.mxu2 %v499_v16 }
 0x176   :  { %v495_v33 = vpop.f32.mrf.mxu3 }
 0x177   :  { %v496_v20 = vadd.f32 %v495_v33, %v448_v32 }
 0x178   :  { %v468_v26 = vpop.f32.mrf.mxu1 }
 0x179   :  { %v505_v24 = vpack.c.bf16 %v496_v20, %v494_v25  ;;  %v469_v30 = vadd.f32 %v468_v26, %v437_v36 }
 0x17b   :  { %617 = vmatmul.bf16.gmra.mxu3 %v505_v24 }
 0x180   :  { %v470_v13 = vpop.f32.mrf.mxu1 }
 0x181   :  { %v471_v1 = vadd.f32 %v470_v13, %v438_v37 }
 0x183   :  { %v500_v55 = vpack.c.bf16 %v471_v1, %v469_v30 }
 0x185   :  { %592 = vmatmul.bf16.gmra.mxu2 %v500_v55 }
 0x188   :  { %v473_v44 = vpop.f32.mrf.mxu1 }
 0x189   :  { %v474_v14 = vadd.f32 %v473_v44, %v439_v19 }
 0x190   :  { %v475_v21 = vpop.f32.mrf.mxu1 }
 0x191   :  { %v476_v22 = vadd.f32 %v475_v21, %v440_v27 }
 0x193   :  { %v501_v59 = vpack.c.bf16 %v476_v22, %v474_v14 }
 0x195   :  { %597 = vmatmul.bf16.gmra.mxu2 %v501_v59 }
 0x198   :  { %v478_v58 = vpop.f32.mrf.mxu1 }
 0x199   :  { %v479_v5 = vadd.f32 %v478_v58, %v441_v60 }
 0x1a0   :  { %v480_v8 = vpop.f32.mrf.mxu1 }
 0x1a1   :  { %v481_v10 = vadd.f32 %v480_v8, %v442_v61 }
 0x1a3   :  { %v502_v11 = vpack.c.bf16 %v481_v10, %v479_v5 }
 0x1a5   :  { %602 = vmatmul.bf16.gmra.mxu2 %v502_v11 }
 0x1a8   :  { %v483_v41 = vpop.f32.mrf.mxu1 }
 0x1a9   :  { %v484_v42 = vadd.f32 %v483_v41, %v443_v50 }
 0x1b0   :  { %v485_v43 = vpop.f32.mrf.mxu1 }
 0x1b1   :  { %v486_v9 = vadd.f32 %v485_v43, %v444_v51 }
 0x1b3   :  { %v503_v18 = vpack.c.bf16 %v486_v9, %v484_v42 }
 0x1b5   :  { %607 = vmatmul.bf16.gmra.mxu2 %v503_v18 }
 0x1e8   :  { %v583_v45 = vpop.f32.mrf.mxu2 }
 0x1ee   :  { %v613_v16 = vpop.f32.mrf.mxu3 }
 0x1ef   :  { %v2207_v36 = vadd.f32 %v1479_v53, %v613_v16 }
 0x1f0   :  { %v585_v6 = vpop.f32.mrf.mxu2 }
 0x1f1   :  { %v635_v55 = vmax.f32 %v2207_v36, 0.0 }
 0x1f6   :  { %v615_v17 = vpop.f32.mrf.mxu3 }
 0x1f7   :  { %v2203_v49 = vadd.f32 %v1479_v53, %v615_v17 }
 0x1f8   :  { %v588_v32 = vpop.f32.mrf.mxu2 }
 0x1f9   :  { %v636_v30 = vmax.f32 %v2203_v49, 0.0 }
 0x1fb   :  { %v645_v44 = vpack.c.bf16 %v636_v30, %v635_v55 }
 0x1fe   :  { %v618_v33 = vpop.f32.mrf.mxu3 }
 0x1ff   :  { %v2201_v48 = vadd.f32 %v1479_v53, %v618_v33 }
 0x200   :  { %v590_v25 = vpop.f32.mrf.mxu2 }
 0x201   :  { %v2565_v37 = vmax.f32 %v2201_v48, 0.0 }
 0x206   :  { %v620_v20 = vpop.f32.mrf.mxu3 }
 0x207   :  { %v2205_v26 = vadd.f32 %v1479_v53, %v620_v20  ;;  %v591_v20 = vadd.f32 %v1479_v53, %v590_v25 }
 0x208   :  { %v593_v24 = vpop.f32.mrf.mxu2 }
 0x209   :  { %v2564_v13 = vmax.f32 %v2205_v26, 0.0  ;;  %v2248_v17 = vadd.f32 %v1479_v53, %v593_v24  ;;  %v584_v24 = vadd.f32 %v1479_v53, %v583_v45  ;;  %v1445_v45 = vld [vmem:[%s2544_s2 + $0x78] sm:$0xff] }
 0x20a   :  { %790 = vmatpush.bf16.msrb.mxu0 %v1445_v45 }
 0x20b   :  { %v646_v1 = vpack.c.bf16 %v2564_v13, %v2565_v37  ;;  %v623_v25 = vmax.f32 %v584_v24, 0.0 }
 0x20d   :  { %663 = vmatpush.bf16.msra.mxu3 %v646_v1 }
 0x210   :  { %v595_v19 = vpop.f32.mrf.mxu2 }
 0x211   :  { %664 = vmatpush.bf16.msra.mxu3 %v645_v44  ;;  %v2241_v9 = vadd.f32 %v1479_v53, %v595_v19  ;;  %v589_v19 = vadd.f32 %v1479_v53, %v588_v32  ;;  %v1443_v32 = vld [vmem:[%s2544_s2 + $0x68] sm:$0xff] }
 0x213   :  { %v628_v1 = vmax.f32 %v2241_v9, 0.0 }
 0x218   :  { %v598_v27 = vpop.f32.mrf.mxu2 }
 0x219   :  { %v2238_v43 = vadd.f32 %v1479_v53, %v598_v27  ;;  %v627_v27 = vmax.f32 %v2248_v17, 0.0  ;;  %v1440_v17 = vld [vmem:[%s2544_s2 + $0x50] sm:$0xff] }
 0x21b   :  { %v629_v33 = vmax.f32 %v2238_v43, 0.0 }
 0x220   :  { %v600_v21 = vpop.f32.mrf.mxu2 }
 0x221   :  { %v2231_v41 = vadd.f32 %v1479_v53, %v600_v21  ;;  %v586_v21 = vadd.f32 %v1479_v53, %v585_v6  ;;  %v1444_v6 = vld [vmem:[%s2544_s2 + $0x70] sm:$0xff] }
 0x222   :  { %791 = vmatpush.bf16.msrb.mxu0 %v1444_v6 }
 0x223   :  { %v630_v18 = vmax.f32 %v2231_v41, 0.0 }
 0x225   :  { %v642_v44 = vpack.c.bf16 %v630_v18, %v629_v33 }
 0x226   :  { %792 = vmatpush.bf16.msrb.mxu0 %v1443_v32 }
 0x228   :  { %v603_v14 = vpop.f32.mrf.mxu2 }
 0x229   :  { %v2227_v5 = vadd.f32 %v1479_v53, %v603_v14  ;;  %v626_v14 = vmax.f32 %v591_v20, 0.0  ;;  %v1439_v20 = vld [vmem:[%s2544_s2 + $0x48] sm:$0xff] }
 0x22b   :  { %v631_v42 = vmax.f32 %v2227_v5, 0.0 }
 0x230   :  { %v605_v22 = vpop.f32.mrf.mxu2 }
 0x231   :  { %v2223_v61 = vadd.f32 %v1479_v53, %v605_v22  ;;  %v641_v22 = vpack.c.bf16 %v628_v1, %v627_v27 }
 0x233   :  { %v632_v50 = vmax.f32 %v2223_v61, 0.0 }
 0x235   :  { %v643_v16 = vpack.c.bf16 %v632_v50, %v631_v42 }
 0x238   :  { %v608_v59 = vpop.f32.mrf.mxu2 }
 0x239   :  { %v2221_v58 = vadd.f32 %v1479_v53, %v608_v59  ;;  %v625_v59 = vmax.f32 %v589_v19, 0.0 }
 0x23b   :  { %v633_v10 = vmax.f32 %v2221_v58, 0.0  ;;  %v649_v32 = vmul.f32 %v625_v59, %v2132_v7 }
 0x240   :  { %v610_v60 = vpop.f32.mrf.mxu2 }
 0x241   :  { %v2225_v8 = vadd.f32 %v1479_v53, %v610_v60  ;;  %v624_v60 = vmax.f32 %v586_v21, 0.0  ;;  %v1442_v53 = vld [vmem:[%s2544_s2 + $0x60] sm:$0xff]  ;;  %v647_v21 = vmul.f32 %v623_v25, %v2108_v52 }
 0x242   :  { %793 = vmatpush.bf16.msrb.mxu0 %v1442_v53  ;;  %v650_v53 = vmul.f32 %v626_v14, %v2128_v3 }
 0x243   :  { %v634_v11 = vmax.f32 %v2225_v8, 0.0  ;;  %v639_v9 = vpack.c.bf16 %v624_v60, %v623_v25  ;;  %v651_v25 = vmul.f32 %v627_v27, %v2152_v62 }
 0x245   :  { %v644_v51 = vpack.c.bf16 %v634_v11, %v633_v10 }
 0x247   :  { %665 = vmatpush.bf16.msra.mxu3 %v644_v51  ;;  %v640_v51 = vpack.c.bf16 %v626_v14, %v625_v59  ;;  %v653_v14 = vmul.f32 %v629_v33, %v2164_v15  ;;  %v654_v59 = vmul.f32 %v630_v18, %v2168_v31  ;;  %v657_v18 = vmul.f32 %v633_v10, %v2188_v23 }
 0x24b   :  { %666 = vmatpush.bf16.msra.mxu3 %v643_v16  ;;  %v1441_v16 = vld [vmem:[%s2544_s2 + $0x58] sm:$0xff] }
 0x24c   :  { %794 = vmatpush.bf16.msrb.mxu0 %v1441_v16 }
 0x24f   :  { %667 = vmatpush.bf16.msra.mxu3 %v642_v44  ;;  %v1438_v44 = vld [vmem:[%s2544_s2 + $0x40] sm:$0xff] }
 0x250   :  { %795 = vmatpush.bf16.msrb.mxu0 %v1440_v17 }
 0x253   :  { %668 = vmatpush.bf16.msra.mxu3 %v641_v22  ;;  %v648_v22 = vmul.f32 %v624_v60, %v2104_v40  ;;  %v652_v60 = vmul.f32 %v628_v1, %v2156_v12 }
 0x254   :  { %796 = vmatpush.bf16.msrb.mxu0 %v1439_v20 }
 0x257   :  { %669 = vmatpush.bf16.msra.mxu3 %v640_v51 }
 0x258   :  { %797 = vmatpush.bf16.msrb.mxu0 %v1438_v44 }
 0x25b   :  { %670 = vmatpush.bf16.msra.mxu3 %v639_v9 }
 0x25e   :  { %671 = vmatmul.bf16.vlgmr.msra.gmra.mxu3 %v1936_v54 }
 0x26e   :  { %676 = vmatmul.bf16.gmra.mxu3 %v1999_v38 }
 0x27e   :  { %681 = vmatmul.bf16.gmra.mxu3 %v2025_v46 }
 0x28e   :  { %686 = vmatmul.bf16.gmra.mxu3 %v2043_v4 }
 0x29e   :  { %691 = vmatmul.bf16.gmra.mxu3 %v2072_v57 }
 0x2ae   :  { %696 = vmatmul.bf16.gmra.mxu3 %v2090_v29 }
 0x2be   :  { %701 = vmatmul.bf16.gmra.mxu3 %v1938_v34 }
 0x2ce   :  { %706 = vmatmul.bf16.gmra.mxu3 %v2001_v47 }
 0x2e1   :  { %v672_v19 = vpop.f32.mrf.mxu3 }
 0x2e2   :  { %v673_v51 = vadd.f32 %v672_v19, %v647_v21 }
 0x2e9   :  { %v674_v24 = vpop.f32.mrf.mxu3 }
 0x2ea   :  { %v675_v9 = vadd.f32 %v674_v24, %v648_v22 }
 0x2ec   :  { %v712_v45 = vpack.c.bf16 %v675_v9, %v673_v51 }
 0x2ee   :  { %798 = vmatmul.bf16.vlgmr.msrb.gmra.mxu0 %v712_v45  ;;  %v656_v45 = vmul.f32 %v632_v50, %v2180_v28  ;;  %v659_v50 = vmul.f32 %v635_v55, %v2120_v39 }
 0x2f1   :  { %v677_v6 = vpop.f32.mrf.mxu3 }
 0x2f2   :  { %v678_v17 = vadd.f32 %v677_v6, %v649_v32 }
 0x2f9   :  { %v679_v16 = vpop.f32.mrf.mxu3 }
 0x2fa   :  { %v680_v20 = vadd.f32 %v679_v16, %v650_v53  ;;  %v658_v53 = vmul.f32 %v634_v11, %v2192_v63  ;;  %v2586_v11 = vmax.f32 %v2201_v48, 0.0 }
 0x2fc   :  { %v713_v13 = vpack.c.bf16 %v680_v20, %v678_v17  ;;  %v660_v20 = vmul.f32 %v636_v30, %v2116_v2  ;;  %v1480_v30 = vld [vmem:[%s2545_s3 + $0x1] ss:$0 sm:$0xff] }
 0x2fe   :  { %803 = vmatmul.bf16.gmra.mxu0 %v713_v13 }
 0x301   :  { %v682_v44 = vpop.f32.mrf.mxu3 }
 0x302   :  { %v683_v19 = vadd.f32 %v682_v44, %v651_v25 }
 0x309   :  { %v684_v37 = vpop.f32.mrf.mxu3 }
 0x30a   :  { %v685_v21 = vadd.f32 %v684_v37, %v652_v60  ;;  %v655_v37 = vmul.f32 %v631_v42, %v2176_v56  ;;  %v661_v60 = vmul.f32 %v2586_v11, %v2140_v35 }
 0x30c   :  { %v714_v22 = vpack.c.bf16 %v685_v21, %v683_v19  ;;  %v2587_v19 = vmax.f32 %v2205_v26, 0.0 }
 0x30e   :  { %808 = vmatmul.bf16.gmra.mxu0 %v714_v22  ;;  %v662_v21 = vmul.f32 %v2587_v19, %v2144_v0 }
 0x311   :  { %v687_v24 = vpop.f32.mrf.mxu3 }
 0x312   :  { %v688_v51 = vadd.f32 %v687_v24, %v653_v14 }
 0x319   :  { %v689_v13 = vpop.f32.mrf.mxu3 }
 0x31a   :  { %v690_v9 = vadd.f32 %v689_v13, %v654_v59 }
 0x31c   :  { %v715_v27 = vpack.c.bf16 %v690_v9, %v688_v51 }
 0x31e   :  { %813 = vmatmul.bf16.gmra.mxu0 %v715_v27 }
 0x321   :  { %v692_v1 = vpop.f32.mrf.mxu3 }
 0x322   :  { %v693_v33 = vadd.f32 %v692_v1, %v655_v37 }
 0x329   :  { %v694_v43 = vpop.f32.mrf.mxu3 }
 0x32a   :  { %v695_v6 = vadd.f32 %v694_v43, %v656_v45 }
 0x32c   :  { %v716_v32 = vpack.c.bf16 %v695_v6, %v693_v33 }
 0x32e   :  { %818 = vmatmul.bf16.gmra.mxu0 %v716_v32 }
 0x331   :  { %v697_v41 = vpop.f32.mrf.mxu3 }
 0x332   :  { %v698_v42 = vadd.f32 %v697_v41, %v657_v18 }
 0x339   :  { %v699_v5 = vpop.f32.mrf.mxu3 }
 0x33a   :  { %v700_v16 = vadd.f32 %v699_v5, %v658_v53 }
 0x33c   :  { %v717_v17 = vpack.c.bf16 %v700_v16, %v698_v42 }
 0x33e   :  { %823 = vmatmul.bf16.gmra.mxu0 %v717_v17 }
 0x341   :  { %v702_v61 = vpop.f32.mrf.mxu3 }
 0x342   :  { %v703_v10 = vadd.f32 %v702_v61, %v659_v50 }
 0x349   :  { %v704_v58 = vpop.f32.mrf.mxu3 }
 0x34a   :  { %v705_v44 = vadd.f32 %v704_v58, %v660_v20 }
 0x34c   :  { %v718_v25 = vpack.c.bf16 %v705_v44, %v703_v10 }
 0x34e   :  { %828 = vmatmul.bf16.gmra.mxu0 %v718_v25 }
 0x351   :  { %v707_v8 = vpop.f32.mrf.mxu3 }
 0x352   :  { %v708_v55 = vadd.f32 %v707_v8, %v661_v60 }
 0x359   :  { %v709_v36 = vpop.f32.mrf.mxu3 }
 0x35a   :  { %v710_v22 = vadd.f32 %v709_v36, %v662_v21 }
 0x35c   :  { %v719_v24 = vpack.c.bf16 %v710_v22, %v708_v55 }
 0x35e   :  { %833 = vmatmul.bf16.gmra.mxu0 %v719_v24 }
 0x36b   :  { %v799_v49 = vpop.f32.mrf.mxu0 }
 0x36c   :  { %v2328_v14 = vadd.f32 %v1480_v30, %v799_v49 }
 0x36e   :  { %v839_v48 = vmax.f32 %v2328_v14, 0.0 }
 0x373   :  { %v801_v59 = vpop.f32.mrf.mxu0 }
 0x374   :  { %v2330_v13 = vadd.f32 %v1480_v30, %v801_v59 }
 0x376   :  { %v840_v26 = vmax.f32 %v2330_v13, 0.0 }
 0x378   :  { %v855_v51 = vpack.c.bf16 %v840_v26, %v839_v48 }
 0x37b   :  { %v804_v9 = vpop.f32.mrf.mxu0 }
 0x37c   :  { %v2338_v27 = vadd.f32 %v1480_v30, %v804_v9 }
 0x37e   :  { %v841_v45 = vmax.f32 %v2338_v27, 0.0 }
 0x383   :  { %v806_v1 = vpop.f32.mrf.mxu0 }
 0x384   :  { %v2340_v37 = vadd.f32 %v1480_v30, %v806_v1 }
 0x386   :  { %v842_v43 = vmax.f32 %v2340_v37, 0.0 }
 0x388   :  { %v856_v33 = vpack.c.bf16 %v842_v43, %v841_v45 }
 0x38b   :  { %v809_v6 = vpop.f32.mrf.mxu0 }
 0x38c   :  { %v2348_v32 = vadd.f32 %v1480_v30, %v809_v6 }
 0x38e   :  { %v843_v53 = vmax.f32 %v2348_v32, 0.0 }
 0x390   :  { %v867_v13 = vmul.f32 %v843_v53, %v2152_v62 }
 0x393   :  { %v811_v41 = vpop.f32.mrf.mxu0 }
 0x394   :  { %v2350_v18 = vadd.f32 %v1480_v30, %v811_v41 }
 0x396   :  { %v844_v5 = vmax.f32 %v2350_v18, 0.0 }
 0x398   :  { %v857_v42 = vpack.c.bf16 %v844_v5, %v843_v53 }
 0x39b   :  { %v814_v16 = vpop.f32.mrf.mxu0 }
 0x39c   :  { %v2358_v17 = vadd.f32 %v1480_v30, %v814_v16 }
 0x39e   :  { %v845_v20 = vmax.f32 %v2358_v17, 0.0 }
 0x3a0   :  { %v869_v37 = vmul.f32 %v845_v20, %v2164_v15 }
 0x3a3   :  { %v816_v61 = vpop.f32.mrf.mxu0 }
 0x3a4   :  { %v2360_v50 = vadd.f32 %v1480_v30, %v816_v61 }
 0x3a6   :  { %v846_v58 = vmax.f32 %v2360_v50, 0.0 }
 0x3a8   :  { %v858_v10 = vpack.c.bf16 %v846_v58, %v845_v20 }
 0x3ab   :  { %v819_v44 = vpop.f32.mrf.mxu0 }
 0x3b3   :  { %v821_v25 = vpop.f32.mrf.mxu0 }
 0x3bb   :  { %v824_v8 = vpop.f32.mrf.mxu0 }
 0x3bc   :  { %v2385_v16 = vadd.f32 %v1480_v30, %v824_v8 }
 0x3c3   :  { %v826_v11 = vpop.f32.mrf.mxu0 }
 0x3c4   :  { %v2378_v1 = vadd.f32 %v1480_v30, %v826_v11 }
 0x3cb   :  { %v829_v60 = vpop.f32.mrf.mxu0 }
 0x3cc   :  { %v2374_v49 = vadd.f32 %v1480_v30, %v829_v60  ;;  %v2388_v60 = vadd.f32 %v1480_v30, %v821_v25 }
 0x3ce   :  { %v851_v61 = vmax.f32 %v2374_v49, 0.0  ;;  %v848_v8 = vmax.f32 %v2388_v60, 0.0 }
 0x3d0   :  { %v875_v60 = vmul.f32 %v851_v61, %v2120_v39 }
 0x3d3   :  { %v831_v19 = vpop.f32.mrf.mxu0 }
 0x3d4   :  { %v2370_v22 = vadd.f32 %v1480_v30, %v831_v19  ;;  %v850_v19 = vmax.f32 %v2378_v1, 0.0 }
 0x3d6   :  { %v852_v6 = vmax.f32 %v2370_v22, 0.0  ;;  %v2491_v22 = vld [vmem:[%s2545_s3 + $0x2] ss:$0 sm:$0xff] }
 0x3d8   :  { %v861_v11 = vpack.c.bf16 %v852_v6, %v851_v61 }
 0x3db   :  { %v834_v21 = vpop.f32.mrf.mxu0 }
 0x3dc   :  { %v2368_v36 = vadd.f32 %v1480_v30, %v834_v21  ;;  %v2395_v21 = vadd.f32 %v1480_v30, %v819_v44 }
 0x3de   :  { %v853_v59 = vmax.f32 %v2368_v36, 0.0 }
 0x3e0   :  { %v877_v1 = vmul.f32 %v853_v59, %v2140_v35 }
 0x3e3   :  { %v836_v55 = vpop.f32.mrf.mxu0 }
 0x3e4   :  { %v2372_v24 = vadd.f32 %v1480_v30, %v836_v55  ;;  %v849_v55 = vmax.f32 %v2385_v16, 0.0  ;;  %v1453_v30 = vld [vmem:[%s2544_s2 + $0xb8] sm:$0xff] }
 0x3e5   :  { %1006 = vmatpush.bf16.msrb.mxu2 %v1453_v30  ;;  %v865_v30 = vmul.f32 %v841_v45, %v2132_v7 }
 0x3e6   :  { %v2566_v9 = vmax.f32 %v2372_v24, 0.0  ;;  %v860_v25 = vpack.c.bf16 %v850_v19, %v849_v55  ;;  %v873_v50 = vmul.f32 %v849_v55, %v2188_v23 }
 0x3e8   :  { %v862_v41 = vpack.c.bf16 %v2566_v9, %v853_v59 }
 0x3ea   :  { %879 = vmatpush.bf16.msrb.mxu1 %v862_v41  ;;  %v847_v41 = vmax.f32 %v2395_v21, 0.0 }
 0x3ec   :  { %v859_v9 = vpack.c.bf16 %v848_v8, %v847_v41  ;;  %v871_v18 = vmul.f32 %v847_v41, %v2176_v56 }
 0x3ee   :  { %880 = vmatpush.bf16.msrb.mxu1 %v861_v11 }
 0x3f2   :  { %881 = vmatpush.bf16.msrb.mxu1 %v860_v25 }
 0x3f6   :  { %882 = vmatpush.bf16.msrb.mxu1 %v859_v9 }
 0x3fa   :  { %883 = vmatpush.bf16.msrb.mxu1 %v858_v10 }
 0x3fe   :  { %884 = vmatpush.bf16.msrb.mxu1 %v857_v42  ;;  %v863_v42 = vmul.f32 %v839_v48, %v2108_v52 }
 0x402   :  { %885 = vmatpush.bf16.msrb.mxu1 %v856_v33  ;;  %v1452_v33 = vld [vmem:[%s2544_s2 + $0xb0] sm:$0xff] }
 0x403   :  { %1007 = vmatpush.bf16.msrb.mxu2 %v1452_v33 }
 0x406   :  { %886 = vmatpush.bf16.msrb.mxu1 %v855_v51 }
 0x409   :  { %887 = vmatmul.bf16.vlgmr.msrb.gmra.mxu1 %v1936_v54  ;;  %v1451_v54 = vld [vmem:[%s2544_s2 + $0xa8] sm:$0xff] }
 0x40a   :  { %1008 = vmatpush.bf16.msrb.mxu2 %v1451_v54 }
 0x419   :  { %892 = vmatmul.bf16.gmra.mxu1 %v1999_v38  ;;  %v1450_v38 = vld [vmem:[%s2544_s2 + $0xa0] sm:$0xff] }
 0x41a   :  { %1009 = vmatpush.bf16.msrb.mxu2 %v1450_v38 }
 0x429   :  { %897 = vmatmul.bf16.gmra.mxu1 %v2025_v46  ;;  %v1449_v46 = vld [vmem:[%s2544_s2 + $0x98] sm:$0xff] }
 0x42a   :  { %1010 = vmatpush.bf16.msrb.mxu2 %v1449_v46 }
 0x439   :  { %902 = vmatmul.bf16.gmra.mxu1 %v2043_v4  ;;  %v1448_v4 = vld [vmem:[%s2544_s2 + $0x90] sm:$0xff] }
 0x43a   :  { %1011 = vmatpush.bf16.msrb.mxu2 %v1448_v4 }
 0x449   :  { %907 = vmatmul.bf16.gmra.mxu1 %v2072_v57  ;;  %v1447_v57 = vld [vmem:[%s2544_s2 + $0x88] sm:$0xff] }
 0x44a   :  { %1012 = vmatpush.bf16.msrb.mxu2 %v1447_v57 }
 0x459   :  { %912 = vmatmul.bf16.gmra.mxu1 %v2090_v29  ;;  %v1446_v29 = vld [vmem:[%s2544_s2 + $0x80] sm:$0xff] }
 0x45a   :  { %1013 = vmatpush.bf16.msrb.mxu2 %v1446_v29 }
 0x469   :  { %917 = vmatmul.bf16.gmra.mxu1 %v1938_v34  ;;  %v864_v34 = vmul.f32 %v840_v26, %v2104_v40  ;;  %v868_v26 = vmul.f32 %v844_v5, %v2156_v12  ;;  %v872_v5 = vmul.f32 %v848_v8, %v2180_v28  ;;  %v876_v8 = vmul.f32 %v852_v6, %v2116_v2 }
 0x479   :  { %922 = vmatmul.bf16.gmra.mxu1 %v2001_v47  ;;  %v866_v47 = vmul.f32 %v842_v43, %v2128_v3  ;;  %v870_v43 = vmul.f32 %v846_v58, %v2168_v31  ;;  %v874_v58 = vmul.f32 %v850_v19, %v2192_v63  ;;  %v2588_v19 = vmax.f32 %v2372_v24, 0.0 }
 0x47b   :  { %v878_v29 = vmul.f32 %v2588_v19, %v2144_v0 }
 0x486   :  { %v888_v51 = vpop.f32.mrf.mxu1 }
 0x487   :  { %v889_v44 = vadd.f32 %v888_v51, %v863_v42 }
 0x48e   :  { %v890_v10 = vpop.f32.mrf.mxu1 }
 0x48f   :  { %v891_v9 = vadd.f32 %v890_v10, %v864_v34 }
 0x491   :  { %v928_v11 = vpack.c.bf16 %v891_v9, %v889_v44 }
 0x493   :  { %1014 = vmatmul.bf16.vlgmr.msrb.gmra.mxu2 %v928_v11 }
 0x496   :  { %v893_v25 = vpop.f32.mrf.mxu1 }
 0x497   :  { %v894_v52 = vadd.f32 %v893_v25, %v865_v30 }
 0x49e   :  { %v895_v14 = vpop.f32.mrf.mxu1 }
 0x49f   :  { %v896_v48 = vadd.f32 %v895_v14, %v866_v47 }
 0x4a1   :  { %v929_v33 = vpack.c.bf16 %v896_v48, %v894_v52 }
 0x4a3   :  { %1019 = vmatmul.bf16.gmra.mxu2 %v929_v33 }
 0x4a6   :  { %v898_v40 = vpop.f32.mrf.mxu1 }
 0x4a7   :  { %v899_v7 = vadd.f32 %v898_v40, %v867_v13 }
 0x4ae   :  { %v900_v27 = vpop.f32.mrf.mxu1 }
 0x4af   :  { %v901_v45 = vadd.f32 %v900_v27, %v868_v26 }
 0x4b1   :  { %v930_v54 = vpack.c.bf16 %v901_v45, %v899_v7 }
 0x4b3   :  { %1024 = vmatmul.bf16.gmra.mxu2 %v930_v54 }
 0x4b6   :  { %v903_v3 = vpop.f32.mrf.mxu1 }
 0x4b7   :  { %v904_v62 = vadd.f32 %v903_v3, %v869_v37 }
 0x4be   :  { %v905_v32 = vpop.f32.mrf.mxu1 }
 0x4bf   :  { %v906_v53 = vadd.f32 %v905_v32, %v870_v43 }
 0x4c1   :  { %v931_v38 = vpack.c.bf16 %v906_v53, %v904_v62 }
 0x4c3   :  { %1029 = vmatmul.bf16.gmra.mxu2 %v931_v38 }
 0x4c6   :  { %v908_v12 = vpop.f32.mrf.mxu1 }
 0x4c7   :  { %v909_v15 = vadd.f32 %v908_v12, %v871_v18 }
 0x4ce   :  { %v910_v17 = vpop.f32.mrf.mxu1 }
 0x4cf   :  { %v911_v20 = vadd.f32 %v910_v17, %v872_v5 }
 0x4d1   :  { %v932_v46 = vpack.c.bf16 %v911_v20, %v909_v15 }
 0x4d3   :  { %1034 = vmatmul.bf16.gmra.mxu2 %v932_v46 }
 0x4d6   :  { %v913_v31 = vpop.f32.mrf.mxu1 }
 0x4d7   :  { %v914_v56 = vadd.f32 %v913_v31, %v873_v50 }
 0x4de   :  { %v915_v21 = vpop.f32.mrf.mxu1 }
 0x4df   :  { %v916_v41 = vadd.f32 %v915_v21, %v874_v58 }
 0x4e1   :  { %v933_v4 = vpack.c.bf16 %v916_v41, %v914_v56 }
 0x4e3   :  { %1039 = vmatmul.bf16.gmra.mxu2 %v933_v4  ;;  %v1461_v4 = vld [vmem:[%s2547_s4 + $0x38] sm:$0xff] }
 0x4e4   :  { %1210 = vmatpush.bf16.msrb.mxu3 %v1461_v4 }
 0x4e6   :  { %v918_v28 = vpop.f32.mrf.mxu1 }
 0x4e7   :  { %v919_v23 = vadd.f32 %v918_v28, %v875_v60 }
 0x4ee   :  { %v920_v16 = vpop.f32.mrf.mxu1 }
 0x4ef   :  { %v921_v55 = vadd.f32 %v920_v16, %v876_v8 }
 0x4f1   :  { %v934_v57 = vpack.c.bf16 %v921_v55, %v919_v23 }
 0x4f3   :  { %1044 = vmatmul.bf16.gmra.mxu2 %v934_v57 }
 0x4f6   :  { %v923_v63 = vpop.f32.mrf.mxu1 }
 0x4f7   :  { %v924_v39 = vadd.f32 %v923_v63, %v877_v1 }
 0x4fe   :  { %v925_v49 = vpop.f32.mrf.mxu1 }
 0x4ff   :  { %v926_v61 = vadd.f32 %v925_v49, %v878_v29  ;;  %v1460_v29 = vld [vmem:[%s2547_s4 + $0x30] sm:$0xff] }
 0x500   :  { %1211 = vmatpush.bf16.msrb.mxu3 %v1460_v29 }
 0x501   :  { %v935_v51 = vpack.c.bf16 %v926_v61, %v924_v39  ;;  %v1459_v61 = vld [vmem:[%s2547_s4 + $0x28] sm:$0xff] }
 0x503   :  { %1049 = vmatmul.bf16.gmra.mxu2 %v935_v51  ;;  %v1458_v51 = vld [vmem:[%s2547_s4 + $0x20] sm:$0xff] }
 0x504   :  { %1212 = vmatpush.bf16.msrb.mxu3 %v1459_v61 }
 0x508   :  { %1213 = vmatpush.bf16.msrb.mxu3 %v1458_v51 }
 0x516   :  { %v1015_v2 = vpop.f32.mrf.mxu2 }
 0x517   :  { %v1016_v6 = vadd.f32 %v2491_v22, %v1015_v2 }
 0x519   :  { %v1055_v36 = vmax.f32 %v1016_v6, 0.0  ;;  %v1457_v6 = vld [vmem:[%s2547_s4 + $0x18] sm:$0xff] }
 0x51a   :  { %1214 = vmatpush.bf16.msrb.mxu3 %v1457_v6 }
 0x51e   :  { %v1017_v42 = vpop.f32.mrf.mxu2 }
 0x51f   :  { %v1018_v35 = vadd.f32 %v2491_v22, %v1017_v42 }
 0x521   :  { %v1056_v59 = vmax.f32 %v1018_v35, 0.0 }
 0x523   :  { %v1071_v24 = vmax.f32 %v1055_v36, %v1056_v59  ;;  %v1456_v59 = vld [vmem:[%s2547_s4 + $0x10] sm:$0xff] }
 0x524   :  { %1215 = vmatpush.bf16.msrb.mxu3 %v1456_v59 }
 0x525   :  { %v1072_v34 = vrot.slane %v1071_v24, 4 }
 0x526   :  { %v1020_v0 = vpop.f32.mrf.mxu2 }
 0x527   :  { %v1021_v10 = vadd.f32 %v2491_v22, %v1020_v0  ;;  %v1073_v9 = vmax.f32 %v1071_v24, %v1072_v34 }
 0x529   :  { %v1057_v25 = vmax.f32 %v1021_v10, 0.0  ;;  %v1074_v47 = vrot.slane %v1073_v9, 2 }
 0x52b   :  { %v1075_v33 = vmax.f32 %v1073_v9, %v1074_v47 }
 0x52d   :  { %v1076_v26 = vrot.slane %v1075_v33, 1 }
 0x52e   :  { %v1022_v44 = vpop.f32.mrf.mxu2 }
 0x52f   :  { %v1023_v11 = vadd.f32 %v2491_v22, %v1022_v44  ;;  %v1077_v3 = vmax.f32 %v1075_v33, %v1076_v26 }
 0x531   :  { %v1058_v30 = vmax.f32 %v1023_v11, 0.0  ;;  %v1455_v11 = vld [vmem:[%s2547_s4 + $0x8] sm:$0xff] }
 0x532   :  { %1216 = vmatpush.bf16.msrb.mxu3 %v1455_v11 }
 0x533   :  { %v1078_v14 = vmax.f32 %v1057_v25, %v1058_v30 }
 0x535   :  { %v1079_v52 = vrot.slane %v1078_v14, 4 }
 0x536   :  { %v1025_v48 = vpop.f32.mrf.mxu2 }
 0x537   :  { %v1080_v40 = vmax.f32 %v1078_v14, %v1079_v52  ;;  %v1026_v45 = vadd.f32 %v2491_v22, %v1025_v48  ;;  %v1454_v48 = vld [vmem:[%s2547_s4] sm:$0xff] }
 0x538   :  { %1217 = vmatpush.bf16.msrb.mxu3 %v1454_v48 }
 0x539   :  { %v1081_v13 = vrot.slane %v1080_v40, 2  ;;  %v1059_v62 = vmax.f32 %v1026_v45, 0.0 }
 0x53b   :  { %v1082_v27 = vmax.f32 %v1080_v40, %v1081_v13 }
 0x53d   :  { %v1083_v7 = vrot.slane %v1082_v27, 1 }
 0x53e   :  { %v1027_v54 = vpop.f32.mrf.mxu2 }
 0x53f   :  { %v1084_v37 = vmax.f32 %v1082_v27, %v1083_v7  ;;  %v1028_v43 = vadd.f32 %v2491_v22, %v1027_v54 }
 0x541   :  { %v1128_v32 = vsel %vm1127_vm3, %v1077_v3, %v1084_v37  ;;  %v1060_v53 = vmax.f32 %v1028_v43, 0.0 }
 0x543   :  { %v1085_v38 = vmax.f32 %v1059_v62, %v1060_v53 }
 0x545   :  { %v1086_v12 = vrot.slane %v1085_v38, 4 }
 0x546   :  { %v1030_v18 = vpop.f32.mrf.mxu2 }
 0x547   :  { %v1087_v5 = vmax.f32 %v1085_v38, %v1086_v12  ;;  %v1031_v46 = vadd.f32 %v2491_v22, %v1030_v18 }
 0x549   :  { %v1088_v17 = vrot.slane %v1087_v5, 2  ;;  %v1061_v56 = vmax.f32 %v1031_v46, 0.0 }
 0x54b   :  { %v1089_v15 = vmax.f32 %v1087_v5, %v1088_v17 }
 0x54d   :  { %v1090_v20 = vrot.slane %v1089_v15, 1 }
 0x54e   :  { %v1032_v31 = vpop.f32.mrf.mxu2 }
 0x54f   :  { %v1091_v50 = vmax.f32 %v1089_v15, %v1090_v20  ;;  %v1033_v58 = vadd.f32 %v2491_v22, %v1032_v31 }
 0x551   :  { %v1130_v21 = vsel %vm1129_vm4, %v1128_v32, %v1091_v50  ;;  %v1062_v41 = vmax.f32 %v1033_v58, 0.0 }
 0x553   :  { %v1092_v28 = vmax.f32 %v1061_v56, %v1062_v41 }
 0x555   :  { %v1093_v60 = vrot.slane %v1092_v28, 4 }
 0x556   :  { %v1035_v8 = vpop.f32.mrf.mxu2 }
 0x557   :  { %v1094_v16 = vmax.f32 %v1092_v28, %v1093_v60  ;;  %v1036_v36 = vadd.f32 %v2491_v22, %v1035_v8 }
 0x559   :  { %v1095_v23 = vrot.slane %v1094_v16, 2  ;;  %v1063_v25 = vmax.f32 %v1036_v36, 0.0 }
 0x55b   :  { %v1096_v55 = vmax.f32 %v1094_v16, %v1095_v23 }
 0x55d   :  { %v1097_v57 = vrot.slane %v1096_v55, 1 }
 0x55e   :  { %v1037_v63 = vpop.f32.mrf.mxu2 }
 0x55f   :  { %v1098_v1 = vmax.f32 %v1096_v55, %v1097_v57  ;;  %v1038_v42 = vadd.f32 %v2491_v22, %v1037_v63 }
 0x561   :  { %v2504_v19 = vsel %vm1131_vm5, %v1130_v21, %v1098_v1  ;;  %v1064_v0 = vmax.f32 %v1038_v42, 0.0  ;;  %v1482_v1 = vld [vmem:[%s2546_s5] ss:$0 sm:$0xff] }
 0x563   :  { %v1099_v14 = vmax.f32 %v1063_v25, %v1064_v0 }
 0x565   :  { %v1100_v13 = vrot.slane %v1099_v14, 4 }
 0x566   :  { %v1040_v49 = vpop.f32.mrf.mxu2 }
 0x567   :  { %v1041_v24 = vadd.f32 %v2491_v22, %v1040_v49  ;;  %v1101_v45 = vmax.f32 %v1099_v14, %v1100_v13 }
 0x569   :  { %v1065_v30 = vmax.f32 %v1041_v24, 0.0  ;;  %v1102_v43 = vrot.slane %v1101_v45, 2 }
 0x56b   :  { %v1103_v5 = vmax.f32 %v1101_v45, %v1102_v43 }
 0x56d   :  { %v1104_v31 = vrot.slane %v1103_v5, 1 }
 0x56e   :  { %v1042_v39 = vpop.f32.mrf.mxu2 }
 0x56f   :  { %v1043_v35 = vadd.f32 %v2491_v22, %v1042_v39  ;;  %v1105_v41 = vmax.f32 %v1103_v5, %v1104_v31 }
 0x571   :  { %v1066_v44 = vmax.f32 %v1043_v35, 0.0  ;;  %v1134_v8 = vsel %vm1133_vm6, %v2504_v19, %v1105_v41 }
 0x573   :  { %v1106_v33 = vmax.f32 %v1065_v30, %v1066_v44 }
 0x575   :  { %v1107_v27 = vrot.slane %v1106_v33, 4 }
 0x576   :  { %v1045_v2 = vpop.f32.mrf.mxu2 }
 0x577   :  { %v1046_v34 = vadd.f32 %v2491_v22, %v1045_v2  ;;  %v1108_v54 = vmax.f32 %v1106_v33, %v1107_v27 }
 0x579   :  { %v1067_v52 = vmax.f32 %v1046_v34, 0.0  ;;  %v1109_v62 = vrot.slane %v1108_v54, 2 }
 0x57b   :  { %v1110_v17 = vmax.f32 %v1108_v54, %v1109_v62 }
 0x57d   :  { %v1111_v50 = vrot.slane %v1110_v17, 1 }
 0x57e   :  { %v1047_v10 = vpop.f32.mrf.mxu2 }
 0x57f   :  { %v1048_v9 = vadd.f32 %v2491_v22, %v1047_v10  ;;  %v1112_v4 = vmax.f32 %v1110_v17, %v1111_v50 }
 0x581   :  { %v1068_v47 = vmax.f32 %v1048_v9, 0.0  ;;  %v1136_v16 = vsel %vm1135_vm7, %v1134_v8, %v1112_v4 }
 0x583   :  { %v1113_v40 = vmax.f32 %v1067_v52, %v1068_v47 }
 0x585   :  { %v1114_v7 = vrot.slane %v1113_v40, 4 }
 0x586   :  { %v1050_v26 = vpop.f32.mrf.mxu2 }
 0x587   :  { %v1115_v3 = vmax.f32 %v1113_v40, %v1114_v7  ;;  %v1051_v37 = vadd.f32 %v2491_v22, %v1050_v26 }
 0x589   :  { %v1116_v38 = vrot.slane %v1115_v3, 2  ;;  %v1069_v12 = vmax.f32 %v1051_v37, 0.0 }
 0x58b   :  { %v1117_v20 = vmax.f32 %v1115_v3, %v1116_v38 }
 0x58d   :  { %v1118_v21 = vrot.slane %v1117_v20, 1 }
 0x58e   :  { %v1052_v32 = vpop.f32.mrf.mxu2 }
 0x58f   :  { %v1053_v53 = vadd.f32 %v2491_v22, %v1052_v32  ;;  %v1119_v60 = vmax.f32 %v1117_v20, %v1118_v21 }
 0x591   :  { %v1070_v18 = vmax.f32 %v1053_v53, 0.0  ;;  %v1138_v55 = vsel %vm1137_vm8, %v1136_v16, %v1119_v60 }
 0x593   :  { %v1120_v15 = vmax.f32 %v1069_v12, %v1070_v18 }
 0x595   :  { %v1121_v46 = vrot.slane %v1120_v15, 4 }
 0x597   :  { %v1122_v58 = vmax.f32 %v1120_v15, %v1121_v46 }
 0x599   :  { %v1123_v56 = vrot.slane %v1122_v58, 2 }
 0x59b   :  { %v1124_v28 = vmax.f32 %v1122_v58, %v1123_v56 }
 0x59d   :  { %v1125_v22 = vrot.slane %v1124_v28, 1 }
 0x59f   :  { %v1126_v23 = vmax.f32 %v1124_v28, %v1125_v22 }
 0x5a1   :  { %v1140_v57 = vsel %vm1139_vm9, %v1138_v55, %v1126_v23 }
 0x5a2   :  { %v1141_v63 = vpack.c.bf16 %v1140_v57, %v1140_v57 }
 0x5a4   :  { %1218 = vmatmul.bf16.vlgmr.msrb.gmra.mxu3 %v1141_v63 }
 0x627   :  { %v1219_v29 = vpop.f32.mrf.mxu3 }
 0x628   :  { %v1220_v49 = vadd.f32 %v1482_v1, %v1219_v29 }
 0x62a   :  { %1223 = vst [vmem:[%s2548_s6] sm:$0xff] %v1220_v49 }
 0x62f   :  { %v1221_v39 = vpop.f32.mrf.mxu3 }

</bundles_post_ra>
